<compile_context>
chip_gen: v5e
topology: v5e:2x2
jax: 0.10.0
libtpu: 0.0.40
codegen_flags: <defaults>
</compile_context>

<pallas_src>
import jax
import jax.numpy as jnp
from jax import lax
from jax.experimental import pallas as pl
from jax.experimental.pallas import tpu as pltpu


def _round_up(v, m):
    return -(-int(v) // int(m)) * int(m)


def _vmem_capacity_bytes():
    """Physical VMEM per TensorCore; conservative (v7x-sized) fallback."""
    try:
        cap = getattr(pltpu.get_tpu_info(), "vmem_capacity_bytes", None)
        if cap:
            return int(cap)
    except Exception:
        pass
    return 64 * 1024 * 1024


def _linear(y, weight, bias):
    # nn.Linear: y @ W^T + b, computed once in the wrapper (tiny next to x).
    return (jnp.dot(y.astype(jnp.float32), weight.T.astype(jnp.float32),
                    precision="highest") + bias.astype(jnp.float32))


def _make_kernel(seq_len, hidden, bc, lc, n_bc):
    def kernel(x_ref, wy_ref, mask_ref, out_ref):
        # x_ref:    (TB, L, Hx) native dtype     wy_ref: (TB, Hx) f32
        # mask_ref: (TB, L) int8/int32 (nonzero == masked)
        # out_ref:  (TB, L) f32 (also used to stage the raw scores)

        # ---- Pass 1: bilinear scores, chunked over (batch rows, lane tiles) ----
        # scores[b, l] = sum_h x[b, l, h] * wy[b, h]
        def batch_chunk(bi, carry):
            b0 = pl.multiple_of(bi * bc, bc)
            wc = wy_ref[pl.ds(b0, bc), :]                              # (bc, Hx)
            # Broadcast hoisted out of the L loop (broadcast_in_dim is not CSE'd).
            wcb = jnp.broadcast_to(wc[:, None, :], (bc, lc, hidden))
            for l0 in range(0, seq_len, lc):                           # static unroll
                xc = x_ref[pl.ds(b0, bc), l0:l0 + lc, :].astype(jnp.float32)
                out_ref[pl.ds(b0, bc), l0:l0 + lc] = jnp.sum(xc * wcb, axis=-1)
            return carry

        lax.fori_loop(0, n_bc, batch_chunk, 0)

        # ---- Pass 2: masked softmax over the full sequence ----------------------
        scores = out_ref[...]                                          # (TB, L) f32
        # masked_fill_(x_mask, -inf): a large negative keeps padded (fully
        # masked) rows NaN-free; genuinely all-masked rows become uniform.
        scores = jnp.where(mask_ref[...] != 0, jnp.float32(-1e30), scores)
        m = jnp.max(scores, axis=-1, keepdims=True)
        e = jnp.exp(scores - m)
        denom = jnp.sum(e, axis=-1, keepdims=True)
        out_ref[...] = (e / denom).astype(out_ref.dtype)   # exact normalisation

    return kernel


def bilinear_seq_attn(x, y, x_mask, weight, bias, *, batch_tile=None):
    """x: (B, L, Hx) f32/bf16, y: (B, Hy), x_mask: (B, L) bool (True == masked),
    weight: (Hx, Hy), bias: (Hx,).  Returns softmax attention weights (B, L) f32."""
    B, L, Hx = x.shape

    wy = _linear(y, weight, bias)                                      # (B, Hx) f32

    # ------------------------- VMEM budget & tiling -------------------------
    itemsize = jnp.dtype(x.dtype).itemsize
    sub_tile = {4: 8, 2: 16, 1: 32}.get(itemsize, 8)
    hx_lanes = _round_up(Hx, 128)          # lane padding of the trailing dim
    l_lanes = _round_up(L, 128)

    bc = 8                                  # sublane-aligned batch-row chunk
    lane_chunks = [c for c in (512, 256, 128) if L % c == 0]
    if lane_chunks:
        fitting = [c for c in lane_chunks if 3 * bc * c * hx_lanes * 4 <= (8 << 20)]
        lc = max(fitting) if fitting else min(lane_chunks)
    else:
        lc = L                              # ragged L: one chunk per 8 rows
        # TODO(synk): very large non-128-multiple L*Hx rows would need an
        # L-tiled two-pass (online-softmax) variant to bound the chunk size.

    cap = _vmem_capacity_bytes()
    budget = max(cap - (16 << 20), cap // 2)   # ~112 MiB v5e/v6e, ~48 MiB v7x
    vmem_limit = min(cap, budget + (8 << 20))

    fixed_bytes = 3 * bc * _round_up(lc, 8) * hx_lanes * 4 + (2 << 20)
    per_row = (2 * _round_up(L, sub_tile) * hx_lanes * itemsize   # x, double-buffered
               + 2 * l_lanes * 4                                  # out block
               + 2 * l_lanes * 4                                  # mask block (worst case)
               + 3 * l_lanes * 4                                  # softmax temporaries
               + 2 * hx_lanes * 4)                                # wy block
    tb_fit = max(int((budget - fixed_bytes) // per_row), 1)

    if batch_tile is not None:
        tb = _round_up(max(int(batch_tile), 1), 8)
    elif B <= 32:
        tb = _round_up(B, 8)                # one tile; too small to split further
    else:
        align = 32 if tb_fit >= 32 else 8
        fit = max((tb_fit // align) * align, align)
        # Never a single grid step for B > 32: keep >= 2 "parallel" steps so a
        # 2-TC chip (v7x) can shard the batch axis across both TensorCores.
        half = _round_up(pl.cdiv(B, 2), align)
        tb = max(align, min(fit, half))
        # TODO(synk): if even an 8-row tile cannot fit (huge L*Hx rows), an
        # L-tiled two-pass softmax kernel is required; batch tiling alone
        # covers typical DrQA-sized (B, L, Hx).

    b_pad = _round_up(B, tb)
    if tb % bc != 0:                        # defensive: keep chunking aligned
        bc = tb
    n_bc = tb // bc

    # Narrow integer mask stream (int8 whenever the packed (32, 128) tiling is
    # legal; ~1/Hx of the x bytes either way).
    mask_dtype = jnp.int8 if (tb % 32 == 0 or tb == b_pad) else jnp.int32
    mask = x_mask.astype(mask_dtype)

    # Pad batch to a multiple of the tile (padded rows fully masked, sliced off).
    if b_pad != B:
        extra = b_pad - B
        x = jnp.pad(x, ((0, extra), (0, 0), (0, 0)))
        wy = jnp.pad(wy, ((0, extra), (0, 0)))
        mask = jnp.pad(mask, ((0, extra), (0, 0)), constant_values=1)

    cost = pl.CostEstimate(
        flops=2 * b_pad * L * Hx + 6 * b_pad * L,
        transcendentals=b_pad * L,
        bytes_accessed=b_pad * (L * Hx * itemsize + Hx * 4
                                + L * jnp.dtype(mask_dtype).itemsize + L * 4),
    )

    out = pl.pallas_call(
        _make_kernel(L, Hx, bc, lc, n_bc),
        out_shape=jax.ShapeDtypeStruct((b_pad, L), jnp.float32),
        grid_spec=pltpu.PrefetchScalarGridSpec(
            num_scalar_prefetch=0,
            grid=(b_pad // tb,),
            in_specs=[
                pl.BlockSpec((tb, L, Hx), lambda i: (i, 0, 0)),   # x tile (native dtype)
                pl.BlockSpec((tb, Hx), lambda i: (i, 0)),         # Wy tile (f32)
                pl.BlockSpec((tb, L), lambda i: (i, 0)),          # mask tile (int8)
            ],
            out_specs=pl.BlockSpec((tb, L), lambda i: (i, 0)),    # lane-dense output
        ),
        compiler_params=pltpu.CompilerParams(
            dimension_semantics=("parallel",),    # v7x: shard grid over both TCs
            vmem_limit_bytes=int(vmem_limit),
        ),
        cost_estimate=cost,
    )(x, wy, mask)
    return out[:B] if b_pad != B else out


def _reference(x, y, x_mask, weight, bias):
    wy = _linear(y, weight, bias)
    scores = jnp.sum(x.astype(jnp.float32) * wy[:, None, :], axis=-1)
    scores = jnp.where(x_mask, jnp.float32(-1e30), scores)
    return jax.nn.softmax(scores, axis=-1)


if __name__ == "__main__":
    key = jax.random.PRNGKey(0)
    B, L, Hx, Hy = 48, 128, 64, 48

    kx, ky, kw, kb = jax.random.split(key, 4)
    x = jax.random.normal(kx, (B, L, Hx), dtype=jnp.float32)
    y = jax.random.normal(ky, (B, Hy), dtype=jnp.float32)
    # deterministic nn.Linear(in=Hy, out=Hx) parameters
    weight = jax.random.normal(kw, (Hx, Hy), dtype=jnp.float32) * 0.1
    bias = jax.random.normal(kb, (Hx,), dtype=jnp.float32) * 0.01

    # Tail-padding mask (True == masked), different valid length per row.
    lengths = 32 + (jnp.arange(B) * 7) % (L - 32)
    x_mask = jnp.arange(L)[None, :] >= lengths[:, None]               # (B, L) bool

    ref = _reference(x, y, x_mask, weight, bias)

    # Explicit small tile (tb=16 -> 3 grid steps, exercises the 4-byte mask fallback).
    out = jax.block_until_ready(
        bilinear_seq_attn(x, y, x_mask, weight, bias, batch_tile=16))
    assert out.shape == (B, L)
    assert jnp.allclose(out, ref, atol=1e-4, rtol=1e-4), \
        float(jnp.max(jnp.abs(out - ref)))

    # Auto-tiled path (VMEM-derived tb=32, >=2 grid steps since B > 32, int8 mask).
    out_auto = jax.block_until_ready(bilinear_seq_attn(x, y, x_mask, weight, bias))
    assert jnp.allclose(out_auto, ref, atol=1e-4, rtol=1e-4), \
        float(jnp.max(jnp.abs(out_auto - ref)))

    # bf16 activations: same kernel, half the HBM bytes for the x stream.
    xb, yb = x.astype(jnp.bfloat16), y.astype(jnp.bfloat16)
    out_b = jax.block_until_ready(bilinear_seq_attn(xb, yb, x_mask, weight, bias))
    ref_b = _reference(xb, yb, x_mask, weight, bias)
    assert jnp.allclose(out_b, ref_b, atol=2e-3, rtol=2e-3), \
        float(jnp.max(jnp.abs(out_b - ref_b)))

    print("KERNEL_OK")
</pallas_src>

<mosaic_0001>
module attributes {stable_mosaic.version = 11 : i64} {
  func.func @kernel(%arg0: i32, %arg1: memref<16x128x64xf32, #tpu.memory_space<vmem>>, %arg2: memref<16x64xf32, #tpu.memory_space<vmem>>, %arg3: memref<16x128xi32, #tpu.memory_space<vmem>>, %arg4: memref<16x128xf32, #tpu.memory_space<vmem>>) attributes {dimension_semantics = [#tpu.dimension_semantics<parallel>], iteration_bounds = array<i64: 3>, scalar_prefetch = 0 : i64, scratch_operands = 0 : i64, tpu.core_type = #tpu.core_type<tc>, window_params = [{transform_indices = @transform_0, window_bounds = array<i64: 16, 128, 64>}, {transform_indices = @transform_1, window_bounds = array<i64: 16, 64>}, {transform_indices = @transform_2, window_bounds = array<i64: 16, 128>}, {transform_indices = @transform_3, window_bounds = array<i64: 16, 128>}]} {
    %c0_i32 = arith.constant 0 : i32
    %c2_i32 = arith.constant 2 : i32
    %0 = arith.addi %c0_i32, %c2_i32 : i32
    %c1_i32 = arith.constant 1 : i32
    scf.for %arg5 = %c0_i32 to %0 step %c1_i32  : i32 {
      %c8_i32 = arith.constant 8 : i32
      %17 = arith.muli %arg5, %c8_i32 : i32
      %18 = tpu.assume_multiple %17, 8 : i32
      %19 = arith.index_cast %18 : i32 to index
      %c0_9 = arith.constant 0 : index
      %20 = vector.load %arg2[%19, %c0_9] : memref<16x64xf32, #tpu.memory_space<vmem>>, vector<8x64xf32>
      %21 = vector.shape_cast %20 : vector<8x64xf32> to vector<8x1x64xf32>
      %22 = vector.shape_cast %21 : vector<8x1x64xf32> to vector<8x1x64xf32>
      %23 = vector.broadcast %22 : vector<8x1x64xf32> to vector<8x128x64xf32>
      %24 = arith.index_cast %18 : i32 to index
      %c0_10 = arith.constant 0 : index
      %c0_11 = arith.constant 0 : index
      %25 = vector.load %arg1[%24, %c0_10, %c0_11] : memref<16x128x64xf32, #tpu.memory_space<vmem>>, vector<8x128x64xf32>
      %26 = arith.mulf %25, %23 : vector<8x128x64xf32>
      %cst_12 = arith.constant dense<0.000000e+00> : vector<8x128xf32>
      %27 = vector.multi_reduction <add>, %26, %cst_12 [2] : vector<8x128x64xf32> to vector<8x128xf32>
      %28 = arith.index_cast %18 : i32 to index
      %c0_13 = arith.constant 0 : index
      %29 = vector.load %arg4[%28, %c0_13] : memref<16x128xf32, #tpu.memory_space<vmem>>, vector<8x128xf32>
      tpu.vector_store %arg4[%28, %c0_13], %27 {strides = array<i32>} : memref<16x128xf32, #tpu.memory_space<vmem>>, vector<8x128xf32>,
    }
    %c2_i32_0 = arith.constant 2 : i32
    %c0 = arith.constant 0 : index
    %c0_1 = arith.constant 0 : index
    %1 = vector.load %arg4[%c0, %c0_1] : memref<16x128xf32, #tpu.memory_space<vmem>>, vector<16x128xf32>
    %c0_2 = arith.constant 0 : index
    %c0_3 = arith.constant 0 : index
    %2 = vector.load %arg3[%c0_2, %c0_3] : memref<16x128xi32, #tpu.memory_space<vmem>>, vector<16x128xi32>
    %c0_i32_4 = arith.constant 0 : i32
    %3 = vector.broadcast %c0_i32_4 : i32 to vector<16x128xi32>
    %4 = arith.cmpi ne, %2, %3 : vector<16x128xi32>
    %cst = arith.constant -1.000000e+30 : f32
    %5 = vector.broadcast %cst : f32 to vector<16x128xf32>
    %6 = arith.select %4, %5, %1 : vector<16x128xi1>, vector<16x128xf32>
    %cst_5 = arith.constant dense<0xFF800000> : vector<16xf32>
    %7 = vector.multi_reduction <maximumf>, %6, %cst_5 [1] : vector<16x128xf32> to vector<16xf32>
    %8 = vector.shape_cast %7 : vector<16xf32> to vector<16x1xf32>
    %9 = vector.broadcast %8 : vector<16x1xf32> to vector<16x128xf32>
    %10 = arith.subf %6, %9 : vector<16x128xf32>
    %11 = math.exp %10 : vector<16x128xf32>
    %cst_6 = arith.constant dense<0.000000e+00> : vector<16xf32>
    %12 = vector.multi_reduction <add>, %11, %cst_6 [1] : vector<16x128xf32> to vector<16xf32>
    %13 = vector.shape_cast %12 : vector<16xf32> to vector<16x1xf32>
    %14 = vector.broadcast %13 : vector<16x1xf32> to vector<16x128xf32>
    %15 = arith.divf %11, %14 : vector<16x128xf32>
    %c0_7 = arith.constant 0 : index
    %c0_8 = arith.constant 0 : index
    %16 = vector.load %arg4[%c0_7, %c0_8] : memref<16x128xf32, #tpu.memory_space<vmem>>, vector<16x128xf32>
    tpu.vector_store %arg4[%c0_7, %c0_8], %15 {strides = array<i32>} : memref<16x128xf32, #tpu.memory_space<vmem>>, vector<16x128xf32>,
    return
  }
  func.func @transform_0(%arg0: i32) -> (i32, i32, i32) {
    %c0_i32 = arith.constant 0 : i32
    %c0_i32_0 = arith.constant 0 : i32
    %c0_i32_1 = arith.constant 0 : i32
    return %arg0, %c0_i32, %c0_i32_0 : i32, i32, i32
  }
  func.func @transform_1(%arg0: i32) -> (i32, i32) {
    %c0_i32 = arith.constant 0 : i32
    %c0_i32_0 = arith.constant 0 : i32
    return %arg0, %c0_i32 : i32, i32
  }
  func.func @transform_2(%arg0: i32) -> (i32, i32) {
    %c0_i32 = arith.constant 0 : i32
    %c0_i32_0 = arith.constant 0 : i32
    return %arg0, %c0_i32 : i32, i32
  }
  func.func @transform_3(%arg0: i32) -> (i32, i32) {
    %c0_i32 = arith.constant 0 : i32
    %c0_i32_0 = arith.constant 0 : i32
    return %arg0, %c0_i32 : i32, i32
  }
}

</mosaic_0001>

<bundles_post_ra>
// kernel: tpu_custom_call.1
= control target key start
LH: loop header
LB: loop body
LE: loop exit
PB: predicated region body
PF: predicated region fallthrough
CT: control target
= control target key end

     0   :  { %8 = vsyncpa [#allocation3], 0  ;;  %s2518_s0 = inlined_call_operand.vmem [shape: f32[48,128,64], index: 0, kind: input, shape index: {}]   ;;  %s2519_s1 = inlined_call_operand.vmem [shape: f32[48,64], index: 1, kind: input, shape index: {}]   ;;  %s2520_s2 = inlined_call_operand.vmem [shape: s32[48,128], index: 2, kind: input, shape index: {}]   ;;  %s2521_s3 = inlined_call_operand.hbm [shape: f32[48,128], index: 3, kind: output, shape index: {}]  }
   0x1   :  { %10 = vsyncpa [#allocation3 + $0x1], 0  ;;  %s1661_s12 = smov 0   ;;  %s1663_s13 = smov 0  }
   0x2   :  { %s1665_s14 = smov 0   ;;  %s1667_s15 = smov 0  }
   0x3 LB: > { %s1486_s16 = sadd.s32 4294967295, %s1633_s15   ;;  %s1487_s17 = sadd.s32 4294967294, %s1633_s15   ;;  %s1633_s15 = sphi %s1667_s15, %s2538_s15   ;;  %s1629_s14 = sphi %s1665_s14, %s2537_s14   ;;  %s1625_s13 = sphi %s1663_s13, %s2536_s13   ;;  %s1621_s12 = sphi %s1661_s12, %s2535_s12  }
   0x4   : > { %s1684_s18 = sadd.s32 1, %s1633_s15   ;;  %s101_s19 = sadd.s32 1, %s1629_s14 }
   0x5   : > { %s98_s20 = ssub.s32 %s1633_s15, %s1684_s18  ;;  %p111_p0 = scmp.ne.s32.totalorder %s1629_s14, %s1625_s13 }
   0x6   : > { %p99_p1 = scmp.eq.s32.totalorder %s98_s20, 0  ;;  %p112_p2 = scmp.eq.s32.totalorder %s1486_s16, 2 }
   0x7   : > { %p117_p3 = scmp.ne.s32.totalorder %s1625_s13, %s1621_s12  ;;  %p118_p4 = scmp.eq.s32.totalorder %s1487_s17, 2 }
   0x8   : > { %s1694_s21 = scalar_select %p99_p1, %s1629_s14, %s101_s19  }
   0x9   : > { %p1696_p5 = por %p112_p2, %p111_p0  ;;  %p1700_p6 = por %p118_p4, %p117_p3 }
   0xa   : > { %p1490_p7 = scmp.ge.s32.totalorder %s1633_s15, 1  ;;  %p164_p8 = scmp.lt.s32.totalorder %s1633_s15, 4 }
   0xc   : > { %p165_p9 = pnand %p1490_p7, %p164_p8 }
   0xd   : > { %s196_s24 = sand.u32 (!%p165_p9), 1, %s1625_s13   ;;  %s1707_s25 = sshll.u32 (!%p165_p9), %s1486_s16, 4 }
   0xe   : > { %168 = sbr.rel (%p165_p9) target bundleno = 772 (0x304), region = 32  ;;  %s1491_s26 = sshll.u32 (!%p165_p9), %s196_s24, 4 }
   0xf   : > { %p200_p10 = scmp.lt.s32.totalorder (!%p165_p9), %s1707_s25, 47  ;;  %s1495_s27 = sshll.u32 (!%p165_p9), %s1486_s16, 1 }
  0x10   : > { %p207_p11 = scmp.lt.s32.totalorder (!%p165_p9), %s1495_s27, 5  ;;  %s1728_s16 = scalar_lea.vmem (!%p165_p9), [#allocation2], %s1491_s26 }
  0x11   : > { %s1730_s19 = smov (!%p165_p9), 0  }
  0x13   : > { %s201_s28 = scalar_select %p200_p10, %s1707_s25, 47 }
  0x14   : > { %s2540_s27 = smov (!%p207_p11, %s1495_s27), 5 }
  0x15   : > { %s1506_s29 = sshll.u32 %s201_s28, 7  ;;  %s1496_s6 = sshll.u32 %s2540_s27, 3 }
  0x16   : > { %s1716_s5 = scalar_lea.vmem %s2518_s0, %s1506_s29  ;;  %s1721_s9 = scalar_lea.vmem %s2519_s1, %s1496_s6 }
  0x17   : > { %s1726_s17 = scalar_lea.vmem %s2520_s2, %s1496_s6 }
  0x18 LB: >> { %s1499_s20 = sshll.u32 %s1637_s19, 3  ;;  %s1507_s27 = sshll.u32 %s1637_s19, 10  ;;  %vm510_vm0 = vcmask 523264   ;;  %vm1028_vm1 = vcmask 130112   ;;  %vm1032_vm2 = vcmask 195712   ;;  %vm1036_vm3 = vcmask 261312   ;;  %s1637_s19 = sphi %s1730_s19, %s224_s19  }
  0x19   : >> { %s1740_s28 = scalar_lea.vmem %s1721_s9, %s1499_s20  ;;  %s1743_s26 = scalar_lea.vmem %s1716_s5, %s1507_s27  ;;  %vm1040_vm4 = vcmask 326912   ;;  %vm1044_vm5 = vcmask 392512   ;;  %vm1048_vm6 = vcmask 458112   ;;  %vm1052_vm7 = vcmask 523712  }
  0x1a   : >> { %v1746_v0 = vld [vmem:[%s1740_s28] sm:$0xff]  ;;  %v256_v1 = vld [vmem:[%s1743_s26 + $0x10] sm:$0xff]  ;;  %v257_v8 = vld [vmem:[%s1743_s26 + $0x18] sm:$0xff]  ;;  %vm1056_vm8 = vcmask 589312   ;;  %vm1060_vm9 = vcmask 654912   ;;  %vm1064_vm10 = vcmask 720512   ;;  %s1318_s29 = scalar_lea.vmem %s1728_s16, %s1499_s20 [#allocation2] }
  0x1b   : >> { %v254_v2 = vld [vmem:[%s1743_s26] sm:$0xff]  ;;  %v1751_v3 = vperm.slane %v1746_v0, 0  ;;  %v255_v9 = vld [vmem:[%s1743_s26 + $0x8] sm:$0xff]  ;;  %v261_v20 = vld [vmem:[%s1743_s26 + $0x38] sm:$0xff]  ;;  %v229_v43 = vrot.slane %v1746_v0, 1  ;;  %vm1068_vm11 = vcmask 786112  }
  0x1c   : >> { %v258_v4 = vld [vmem:[%s1743_s26 + $0x20] sm:$0xff]  ;;  %v259_v13 = vld [vmem:[%s1743_s26 + $0x28] sm:$0xff]  ;;  %v260_v21 = vld [vmem:[%s1743_s26 + $0x30] sm:$0xff]  ;;  %vm2523_vm12 = vcmask 851712   ;;  %vm2522_vm13 = vcmask 917312   ;;  %vm1080_vm14 = vcmask 982912  }
  0x1d   : >> { %v384_v5 = vmul.f32 %v256_v1, %v1751_v3  ;;  %v382_v6 = vmul.f32 %v254_v2, %v1751_v3  ;;  %v386_v7 = vmul.f32 %v258_v4, %v1751_v3  ;;  %v385_v14 = vmul.f32 %v257_v8, %v1751_v3  ;;  %v262_v22 = vld [vmem:[%s1743_s26 + $0x40] sm:$0xff]  ;;  %v264_v29 = vld [vmem:[%s1743_s26 + $0x50] sm:$0xff]  ;;  %v263_v30 = vld [vmem:[%s1743_s26 + $0x48] sm:$0xff]  ;;  %s224_s19 = sadd.s32 1, %s1637_s19  }
  0x1e   : >> { %v383_v15 = vmul.f32 %v255_v9, %v1751_v3  ;;  %v387_v16 = vmul.f32 %v259_v13, %v1751_v3  ;;  %v389_v23 = vmul.f32 %v261_v20, %v1751_v3  ;;  %v388_v24 = vmul.f32 %v260_v21, %v1751_v3  ;;  %v265_v31 = vld [vmem:[%s1743_s26 + $0x58] sm:$0xff]  ;;  %v267_v38 = vld [vmem:[%s1743_s26 + $0x68] sm:$0xff]  ;;  %v266_v39 = vld [vmem:[%s1743_s26 + $0x60] sm:$0xff]  ;;  %p221_p12 = scmp.ge.s32.totalorder %s224_s19, 2  }
  0x1f   : >> { %v517_v10 = vsel %vm510_vm0, %v384_v5, 0.0  ;;  %v511_v11 = vsel %vm510_vm0, %v382_v6, 0.0  ;;  %v523_v12 = vsel %vm510_vm0, %v386_v7, 0.0  ;;  %v520_v17 = vsel %vm510_vm0, %v385_v14, 0.0  ;;  %v268_v40 = vld [vmem:[%s1743_s26 + $0x70] sm:$0xff]  ;;  %v269_v49 = vld [vmem:[%s1743_s26 + $0x78] sm:$0xff]  ;;  %s1386_s5 = scalar_lea.hbm (%p221_p12), %s2521_s3, %s1707_s25 }
  0x20   : >> { %518 = vadd.xlane.f32.xlu1 %v517_v10  ;;  %512 = vadd.xlane.f32.xlu0 %v511_v11  ;;  %v514_v18 = vsel %vm510_vm0, %v383_v15, 0.0  ;;  %v526_v19 = vsel %vm510_vm0, %v387_v16, 0.0  ;;  %v390_v25 = vmul.f32 %v262_v22, %v1751_v3  ;;  %v532_v26 = vsel %vm510_vm0, %v389_v23, 0.0  ;;  %v270_v50 = vld [vmem:[%s1743_s26 + $0x80] sm:$0xff]  ;;  %v271_v51 = vld [vmem:[%s1743_s26 + $0x88] sm:$0xff]  ;;  %v272_v58 = vld [vmem:[%s1743_s26 + $0x90] sm:$0xff] }
  0x21   : >> { %524 = vadd.xlane.f32.xlu2 %v523_v12  ;;  %v529_v27 = vsel %vm510_vm0, %v388_v24, 0.0  ;;  %v392_v32 = vmul.f32 %v264_v29, %v1751_v3  ;;  %v391_v33 = vmul.f32 %v263_v30, %v1751_v3  ;;  %v393_v34 = vmul.f32 %v265_v31, %v1751_v3  ;;  %v273_v59 = vld [vmem:[%s1743_s26 + $0x98] sm:$0xff]  ;;  %v274_v60 = vld [vmem:[%s1743_s26 + $0xa0] sm:$0xff]  ;;  %v275_v4 = vld [vmem:[%s1743_s26 + $0xa8] sm:$0xff]  ;;  %s1387_s6 = sshll.u32 (%p221_p12), %s1728_s16, 4  ;;  %s2485_s7 = sshll.u32 (%p221_p12), %s1386_s5, 4  ;;  %s1388_s6 = int_to_ptr.vmem [resolvable:$true] %s1387_s6  ;;  %s1390_s7 = int_to_ptr.hbm [resolvable:$true] %s2485_s7 }
  0x22   : >> { %v535_v28 = vsel %vm510_vm0, %v390_v25, 0.0  ;;  %v395_v41 = vmul.f32 %v267_v38, %v1751_v3  ;;  %v394_v42 = vmul.f32 %v266_v39, %v1751_v3  ;;  %v396_v44 = vmul.f32 %v268_v40, %v1751_v3  ;;  %v276_v5 = vld [vmem:[%s1743_s26 + $0xb0] sm:$0xff]  ;;  %v277_v6 = vld [vmem:[%s1743_s26 + $0xb8] sm:$0xff]  ;;  %v278_v13 = vld [vmem:[%s1743_s26 + $0xc0] sm:$0xff]  ;;  %s1375_s25 = scalar_lea.sflag (%p221_p12), [#allocation3], %s196_s24  ;;  %s1581_s8 = sshra.s32 (%p221_p12), %s1390_s7, 4  ;;  %s1582_s8 = int_to_ptr.hbm [resolvable:$true] %s1581_s8 }
  0x23   : >> { %v541_v35 = vsel %vm510_vm0, %v392_v32, 0.0  ;;  %v538_v36 = vsel %vm510_vm0, %v391_v33, 0.0  ;;  %v544_v37 = vsel %vm510_vm0, %v393_v34, 0.0  ;;  %v1796_v47 = vperm.slane %v229_v43, 0  ;;  %v279_v14 = vld [vmem:[%s1743_s26 + $0xc8] sm:$0xff]  ;;  %v280_v15 = vld [vmem:[%s1743_s26 + $0xd0] sm:$0xff]  ;;  %p1588_p2 = scmp.lt.s32.totalorder (%p221_p12), %s1582_s8, %s2521_s3 }
  0x24   : >> { %v550_v45 = vsel %vm510_vm0, %v395_v41, 0.0  ;;  %v547_v46 = vsel %vm510_vm0, %v394_v42, 0.0  ;;  %v553_v48 = vsel %vm510_vm0, %v396_v44, 0.0  ;;  %v397_v52 = vmul.f32 %v269_v49, %v1751_v3  ;;  %v281_v22 = vld [vmem:[%s1743_s26 + $0xd8] sm:$0xff]  ;;  %v282_v23 = vld [vmem:[%s1743_s26 + $0xe0] sm:$0xff]  ;;  %v283_v24 = vld [vmem:[%s1743_s26 + $0xe8] sm:$0xff] }
  0x25   : >> { %v398_v53 = vmul.f32 %v270_v50, %v1796_v47  ;;  %v399_v54 = vmul.f32 %v271_v51, %v1796_v47  ;;  %v400_v61 = vmul.f32 %v272_v58, %v1796_v47  ;;  %v401_v62 = vmul.f32 %v273_v59, %v1796_v47  ;;  %v284_v32 = vld [vmem:[%s1743_s26 + $0xf0] sm:$0xff]  ;;  %v285_v33 = vld [vmem:[%s1743_s26 + $0xf8] sm:$0xff]  ;;  %v287_v42 = vld [vmem:[%s1743_s26 + $0x108] sm:$0xff]  ;;  %s1583_s9 = scalar_lea.hbm (%p221_p12), %s1582_s8, 16 }
  0x26   : >> { %v556_v55 = vsel %vm510_vm0, %v397_v52, 0.0  ;;  %v402_v63 = vmul.f32 %v274_v60, %v1796_v47  ;;  %v403_v7 = vmul.f32 %v275_v4, %v1796_v47  ;;  %v404_v8 = vmul.f32 %v276_v5, %v1796_v47  ;;  %v288_v43 = vld [vmem:[%s1743_s26 + $0x110] sm:$0xff]  ;;  %v289_v44 = vld [vmem:[%s1743_s26 + $0x118] sm:$0xff]  ;;  %v290_v51 = vld [vmem:[%s1743_s26 + $0x120] sm:$0xff]  ;;  %p1584_p13 = scmp.ne.s32.totalorder (%p221_p12), %s1582_s8, %s1583_s9 }
  0x27   : >> { %v559_v56 = vsel %vm510_vm0, %v398_v53, 0.0  ;;  %v562_v57 = vsel %vm510_vm0, %v399_v54, 0.0  ;;  %v565_v1 = vsel %vm510_vm0, %v400_v61, 0.0  ;;  %v568_v2 = vsel %vm510_vm0, %v401_v62, 0.0  ;;  %v291_v52 = vld [vmem:[%s1743_s26 + $0x128] sm:$0xff]  ;;  %v292_v53 = vld [vmem:[%s1743_s26 + $0x130] sm:$0xff] }
  0x28   : >> { %521 = vadd.xlane.f32.xlu1 %v520_v17  ;;  %515 = vadd.xlane.f32.xlu0 %v514_v18  ;;  %v571_v3 = vsel %vm510_vm0, %v402_v63, 0.0  ;;  %v405_v9 = vmul.f32 %v277_v6, %v1796_v47  ;;  %v574_v10 = vsel %vm510_vm0, %v403_v7, 0.0  ;;  %v577_v11 = vsel %vm510_vm0, %v404_v8, 0.0  ;;  %v293_v60 = vld [vmem:[%s1743_s26 + $0x138] sm:$0xff]  ;;  %v294_v61 = vld [vmem:[%s1743_s26 + $0x140] sm:$0xff]  ;;  %v295_v62 = vld [vmem:[%s1743_s26 + $0x148] sm:$0xff]  ;;  %p1585_p0 = pnand (%p221_p12), %p1584_p13, %p1696_p5 }
  0x29   : >> { %527 = vadd.xlane.f32.xlu2 %v526_v19  ;;  %v406_v16 = vmul.f32 %v278_v13, %v1796_v47  ;;  %v407_v17 = vmul.f32 %v279_v14, %v1796_v47  ;;  %v408_v18 = vmul.f32 %v280_v15, %v1796_v47  ;;  %v409_v25 = vmul.f32 %v281_v22, %v1796_v47  ;;  %v296_v6 = vld [vmem:[%s1743_s26 + $0x150] sm:$0xff]  ;;  %v297_v7 = vld [vmem:[%s1743_s26 + $0x158] sm:$0xff]  ;;  %v298_v8 = vld [vmem:[%s1743_s26 + $0x160] sm:$0xff] }
  0x2a   : >> { %v580_v12 = vsel %vm510_vm0, %v405_v9, 0.0  ;;  %v299_v15 = vld [vmem:[%s1743_s26 + $0x168] sm:$0xff]  ;;  %vm1084_vm15 = vcmask 1048512   ;;  %p1586_p1 = pneg (%p221_p12), %p1585_p0 }
  0x2b   : >> { %v583_v19 = vsel %vm510_vm0, %v406_v16, 0.0  ;;  %v586_v20 = vsel %vm510_vm0, %v407_v17, 0.0  ;;  %v589_v21 = vsel %vm510_vm0, %v408_v18, 0.0  ;;  %v592_v29 = vsel %vm510_vm0, %v409_v25, 0.0  ;;  %v300_v16 = vld [vmem:[%s1743_s26 + $0x170] sm:$0xff]  ;;  %v301_v17 = vld [vmem:[%s1743_s26 + $0x178] sm:$0xff] }
  0x2c   : >> { %v1023_v18 = vlaneseq }
  0x30   : >> { %533 = vadd.xlane.f32.xlu1 %v532_v26  ;;  %530 = vadd.xlane.f32.xlu0 %v529_v27  ;;  %v410_v26 = vmul.f32 %v282_v23, %v1796_v47  ;;  %v411_v27 = vmul.f32 %v283_v24, %v1796_v47 }
  0x31   : >> { %536 = vadd.xlane.f32.xlu2 %v535_v28  ;;  %v230_v28 = vrot.slane %v1746_v0, 2 }
  0x32   : >> { %v595_v30 = vsel %vm510_vm0, %v410_v26, 0.0  ;;  %v598_v31 = vsel %vm510_vm0, %v411_v27, 0.0  ;;  %v1899_v26 = vand.u32 127, %v1023_v18  ;;  %v310_v18 = vld [vmem:[%s1743_s26 + $0x1c0] sm:$0xff] }
  0x33   : >> { %v1847_v34 = vperm.slane %v230_v28, 0 }
  0x35   : >> { %v418_v54 = vmul.f32 %v290_v51, %v1847_v34  ;;  %v421_v63 = vmul.f32 %v293_v60, %v1847_v34  ;;  %v424_v9 = vmul.f32 %v296_v6, %v1847_v34  ;;  %v429_v22 = vmul.f32 %v301_v17, %v1847_v34 }
  0x36   : >> { %v1943_v60 = vadd.s32 4294967240, %v1899_v26 }
  0x38   : >> { %542 = vadd.xlane.f32.xlu1 %v541_v35  ;;  %539 = vadd.xlane.f32.xlu0 %v538_v36  ;;  %v286_v35 = vld [vmem:[%s1743_s26 + $0x100] sm:$0xff]  ;;  %v412_v36 = vmul.f32 %v284_v32, %v1796_v47  ;;  %v303_v32 = vld [vmem:[%s1743_s26 + $0x188] sm:$0xff] }
  0x39   : >> { %545 = vadd.xlane.f32.xlu2 %v544_v37  ;;  %v413_v37 = vmul.f32 %v285_v33, %v1796_v47  ;;  %v414_v38 = vmul.f32 %v286_v35, %v1847_v34  ;;  %v417_v47 = vmul.f32 %v289_v44, %v1847_v34  ;;  %v304_v33 = vld [vmem:[%s1743_s26 + $0x190] sm:$0xff]  ;;  %v1913_v35 = vadd.s32 4294967288, %v1899_v26 }
  0x3a   : >> { %v601_v39 = vsel %vm510_vm0, %v412_v36, 0.0  ;;  %v1916_v36 = vadd.s32 4294967280, %v1899_v26 }
  0x3b   : >> { %v604_v40 = vsel %vm510_vm0, %v413_v37, 0.0  ;;  %v607_v41 = vsel %vm510_vm0, %v414_v38, 0.0  ;;  %v616_v50 = vsel %vm510_vm0, %v417_v47, 0.0 }
  0x40   : >> { %551 = vadd.xlane.f32.xlu1 %v550_v45  ;;  %548 = vadd.xlane.f32.xlu0 %v547_v46  ;;  %v415_v45 = vmul.f32 %v287_v42, %v1847_v34  ;;  %v416_v46 = vmul.f32 %v288_v43, %v1847_v34 }
  0x41   : >> { %554 = vadd.xlane.f32.xlu2 %v553_v48 }
  0x42   : >> { %v610_v48 = vsel %vm510_vm0, %v415_v45, 0.0  ;;  %v613_v49 = vsel %vm510_vm0, %v416_v46, 0.0 }
  0x48   : >> { %557 = vadd.xlane.f32.xlu0 %v556_v55  ;;  %560 = vadd.xlane.f32.xlu1 %v559_v56  ;;  %v419_v55 = vmul.f32 %v291_v52, %v1847_v34  ;;  %v420_v56 = vmul.f32 %v292_v53, %v1847_v34 }
  0x49   : >> { %563 = vadd.xlane.f32.xlu2 %v562_v57  ;;  %v619_v57 = vsel %vm510_vm0, %v418_v54, 0.0  ;;  %v305_v54 = vld [vmem:[%s1743_s26 + $0x198] sm:$0xff] }
  0x4a   : >> { %v622_v58 = vsel %vm510_vm0, %v419_v55, 0.0  ;;  %v625_v59 = vsel %vm510_vm0, %v420_v56, 0.0  ;;  %v306_v55 = vld [vmem:[%s1743_s26 + $0x1a0] sm:$0xff] }
  0x50   : >> { %566 = vadd.xlane.f32.xlu0 %v565_v1  ;;  %569 = vadd.xlane.f32.xlu1 %v568_v2  ;;  %v422_v1 = vmul.f32 %v294_v61, %v1847_v34  ;;  %v423_v2 = vmul.f32 %v295_v62, %v1847_v34  ;;  %v1946_v61 = vadd.s32 4294967248, %v1899_v26 }
  0x51   : >> { %572 = vadd.xlane.f32.xlu2 %v571_v3  ;;  %v628_v3 = vsel %vm510_vm0, %v421_v63, 0.0  ;;  %v1950_v63 = vadd.s32 4294967232, %v1899_v26 }
  0x52   : >> { %v631_v4 = vsel %vm510_vm0, %v422_v1, 0.0  ;;  %v634_v5 = vsel %vm510_vm0, %v423_v2, 0.0 }
  0x58   : >> { %575 = vadd.xlane.f32.xlu0 %v574_v10  ;;  %578 = vadd.xlane.f32.xlu1 %v577_v11  ;;  %v425_v10 = vmul.f32 %v297_v7, %v1847_v34  ;;  %v426_v11 = vmul.f32 %v298_v8, %v1847_v34 }
  0x59   : >> { %581 = vadd.xlane.f32.xlu2 %v580_v12  ;;  %v637_v12 = vsel %vm510_vm0, %v424_v9, 0.0 }
  0x5a   : >> { %v640_v13 = vsel %vm510_vm0, %v425_v10, 0.0  ;;  %v643_v14 = vsel %vm510_vm0, %v426_v11, 0.0 }
  0x60   : >> { %584 = vadd.xlane.f32.xlu0 %v583_v19  ;;  %587 = vadd.xlane.f32.xlu1 %v586_v20  ;;  %v427_v19 = vmul.f32 %v299_v15, %v1847_v34  ;;  %v428_v20 = vmul.f32 %v300_v16, %v1847_v34  ;;  %v1910_v34 = vadd.s32 4294967272, %v1899_v26  ;;  %v308_v15 = vld [vmem:[%s1743_s26 + $0x1b0] sm:$0xff]  ;;  %v309_v16 = vld [vmem:[%s1743_s26 + $0x1b8] sm:$0xff] }
  0x61   : >> { %590 = vadd.xlane.f32.xlu2 %v589_v21  ;;  %v231_v21 = vrot.slane %v1746_v0, 3 }
  0x62   : >> { %v646_v27 = vsel %vm510_vm0, %v427_v19, 0.0  ;;  %v649_v28 = vsel %vm510_vm0, %v428_v20, 0.0  ;;  %v1969_v20 = vadd.s32 4294967216, %v1899_v26 }
  0x68   : >> { %593 = vadd.xlane.f32.xlu0 %v592_v29  ;;  %596 = vadd.xlane.f32.xlu1 %v595_v30  ;;  %v1903_v29 = vperm.slane %v231_v21, 0  ;;  %v652_v30 = vsel %vm510_vm0, %v429_v22, 0.0  ;;  %v1972_v21 = vadd.s32 4294967224, %v1899_v26  ;;  %v1975_v22 = vadd.s32 4294967208, %v1899_v26 }
  0x69   : >> { %599 = vadd.xlane.f32.xlu2 %v598_v31  ;;  %v302_v31 = vld [vmem:[%s1743_s26 + $0x180] sm:$0xff] }
  0x6a   : >> { %v430_v37 = vmul.f32 %v302_v31, %v1903_v29  ;;  %v431_v38 = vmul.f32 %v303_v32, %v1903_v29  ;;  %v433_v1 = vmul.f32 %v305_v54, %v1903_v29  ;;  %v434_v2 = vmul.f32 %v306_v55, %v1903_v29 }
  0x6c   : >> { %v664_v11 = vsel %vm510_vm0, %v433_v1, 0.0 }
  0x70   : >> { %602 = vadd.xlane.f32.xlu0 %v601_v39  ;;  %605 = vadd.xlane.f32.xlu1 %v604_v40  ;;  %v1921_v39 = vadd.s32 4294967256, %v1899_v26  ;;  %v432_v40 = vmul.f32 %v304_v33, %v1903_v29 }
  0x71   : >> { %608 = vadd.xlane.f32.xlu2 %v607_v41  ;;  %v1925_v41 = vadd.s32 4294967264, %v1899_v26 }
  0x72   : >> { %v661_v53 = vsel %vm510_vm0, %v432_v40, 0.0 }
  0x78   : >> { %611 = vadd.xlane.f32.xlu0 %v610_v48  ;;  %614 = vadd.xlane.f32.xlu1 %v613_v49  ;;  %v655_v49 = vsel %vm510_vm0, %v430_v37, 0.0 }
  0x79   : >> { %617 = vadd.xlane.f32.xlu2 %v616_v50  ;;  %v658_v50 = vsel %vm510_vm0, %v431_v38, 0.0 }
  0x80   : >> { %620 = vadd.xlane.f32.xlu0 %v619_v57  ;;  %623 = vadd.xlane.f32.xlu1 %v622_v58  ;;  %v307_v58 = vld [vmem:[%s1743_s26 + $0x1a8] sm:$0xff] }
  0x81   : >> { %626 = vadd.xlane.f32.xlu2 %v625_v59 }
  0x88   : >> { %629 = vadd.xlane.f32.xlu0 %v628_v3  ;;  %632 = vadd.xlane.f32.xlu1 %v631_v4  ;;  %v435_v4 = vmul.f32 %v307_v58, %v1903_v29 }
  0x89   : >> { %635 = vadd.xlane.f32.xlu2 %v634_v5 }
  0x90   : >> { %638 = vadd.xlane.f32.xlu0 %v637_v12  ;;  %641 = vadd.xlane.f32.xlu1 %v640_v13  ;;  %v667_v12 = vsel %vm510_vm0, %v434_v2, 0.0 }
  0x91   : >> { %644 = vadd.xlane.f32.xlu2 %v643_v14  ;;  %v670_v14 = vsel %vm510_vm0, %v435_v4, 0.0  ;;  %v314_v4 = vld [vmem:[%s1743_s26 + $0x1e0] sm:$0xff] }
  0x93   : >> { %v519_v23 = vpop.xlane.xlu1 %518  ;;  %v513_v24 = vpop.xlane.xlu0 %512 }
  0x94   : >> { %v525_v25 = vpop.xlane.xlu2 %524  ;;  %v1025_v44 = vperm.slane %v513_v24, %v1899_v26  ;;  %v1031_v48 = vperm.slane %v519_v23, %v1916_v36  ;;  %v436_v23 = vmul.f32 %v308_v15, %v1903_v29  ;;  %v437_v24 = vmul.f32 %v309_v16, %v1903_v29 }
  0x95   : >> { %v1039_v56 = vperm.slane %v525_v25, %v1925_v41  ;;  %v438_v25 = vmul.f32 %v310_v18, %v1903_v29 }
  0x96   : >> { %v673_v37 = vsel %vm510_vm0, %v436_v23, 0.0  ;;  %v676_v38 = vsel %vm510_vm0, %v437_v24, 0.0 }
  0x98   : >> { %647 = vadd.xlane.f32.xlu0 %v646_v27  ;;  %650 = vadd.xlane.f32.xlu1 %v649_v28 }
  0x99   : >> { %653 = vadd.xlane.f32.xlu2 %v652_v30 }
  0x9b   : >> { %v522_v42 = vpop.xlane.xlu1 %521  ;;  %v516_v43 = vpop.xlane.xlu0 %515 }
  0x9c   : >> { %v1035_v45 = vperm.slane %v522_v42, %v1910_v34  ;;  %v1027_v46 = vperm.slane %v516_v43, %v1913_v35  ;;  %v528_v47 = vpop.xlane.xlu2 %527  ;;  %v679_v42 = vsel %vm510_vm0, %v438_v25, 0.0  ;;  %v311_v43 = vld [vmem:[%s1743_s26 + $0x1c8] sm:$0xff] }
  0x9d   : >> { %v1043_v52 = vperm.slane %v528_v47, %v1921_v39 }
  0x9e   : >> { %v1029_v51 = vsel %vm1028_vm1, %v1027_v46, %v1025_v44  ;;  %v312_v44 = vld [vmem:[%s1743_s26 + $0x1d0] sm:$0xff]  ;;  %v313_v46 = vld [vmem:[%s1743_s26 + $0x1d8] sm:$0xff] }
  0x9f   : >> { %v1033_v57 = vsel %vm1032_vm2, %v1031_v48, %v1029_v51  ;;  %v1993_v48 = vadd.s32 4294967192, %v1899_v26  ;;  %v439_v51 = vmul.f32 %v311_v43, %v1903_v29 }
  0xa0   : >> { %v1037_v59 = vsel %vm1036_vm3, %v1035_v45, %v1033_v57  ;;  %656 = vadd.xlane.f32.xlu0 %v655_v49  ;;  %659 = vadd.xlane.f32.xlu1 %v658_v50  ;;  %v1996_v49 = vadd.s32 4294967200, %v1899_v26  ;;  %v1999_v50 = vadd.s32 4294967184, %v1899_v26 }
  0xa1   : >> { %v1041_v62 = vsel %vm1040_vm4, %v1039_v56, %v1037_v59  ;;  %662 = vadd.xlane.f32.xlu2 %v661_v53  ;;  %v441_v53 = vmul.f32 %v313_v46, %v1903_v29 }
  0xa2   : >> { %v1045_v3 = vsel %vm1044_vm5, %v1043_v52, %v1041_v62  ;;  %v440_v52 = vmul.f32 %v312_v44, %v1903_v29  ;;  %v682_v62 = vsel %vm510_vm0, %v439_v51, 0.0 }
  0xa3   : >> { %v534_v5 = vpop.xlane.xlu1 %533  ;;  %v531_v6 = vpop.xlane.xlu0 %530 }
  0xa4   : >> { %v1051_v7 = vperm.slane %v534_v5, %v1943_v60  ;;  %v1047_v8 = vperm.slane %v531_v6, %v1946_v61  ;;  %v537_v9 = vpop.xlane.xlu2 %536  ;;  %v685_v1 = vsel %vm510_vm0, %v440_v52, 0.0  ;;  %v315_v5 = vld [vmem:[%s1743_s26 + $0x1e8] sm:$0xff] }
  0xa5   : >> { %v1055_v10 = vperm.slane %v537_v9, %v1950_v63  ;;  %v2017_v9 = vadd.s32 4294967176, %v1899_v26 }
  0xa6   : >> { %v1049_v13 = vsel %vm1048_vm6, %v1047_v8, %v1045_v3  ;;  %v688_v3 = vsel %vm510_vm0, %v441_v53, 0.0 }
  0xa7   : >> { %v1053_v17 = vsel %vm1052_vm7, %v1051_v7, %v1049_v13  ;;  %v316_v7 = vld [vmem:[%s1743_s26 + $0x1f0] sm:$0xff] }
  0xa8   : >> { %v1057_v19 = vsel %vm1056_vm8, %v1055_v10, %v1053_v17  ;;  %665 = vadd.xlane.f32.xlu0 %v664_v11  ;;  %668 = vadd.xlane.f32.xlu1 %v667_v12  ;;  %v442_v10 = vmul.f32 %v314_v4, %v1903_v29  ;;  %v443_v11 = vmul.f32 %v315_v5, %v1903_v29  ;;  %v232_v12 = vrot.slane %v1746_v0, 4 }
  0xa9   : >> { %671 = vadd.xlane.f32.xlu2 %v670_v14  ;;  %v444_v13 = vmul.f32 %v316_v7, %v1903_v29 }
  0xaa   : >> { %v691_v23 = vsel %vm510_vm0, %v442_v10, 0.0  ;;  %v694_v24 = vsel %vm510_vm0, %v443_v11, 0.0  ;;  %v2028_v25 = vperm.slane %v232_v12, 0 }
  0xab   : >> { %v543_v27 = vpop.xlane.xlu1 %542  ;;  %v540_v28 = vpop.xlane.xlu0 %539 }
  0xac   : >> { %v1063_v30 = vperm.slane %v543_v27, %v1969_v20  ;;  %v1059_v31 = vperm.slane %v540_v28, %v1972_v21  ;;  %v546_v32 = vpop.xlane.xlu2 %545  ;;  %v697_v28 = vsel %vm510_vm0, %v444_v13, 0.0  ;;  %v323_v13 = vld [vmem:[%s1743_s26 + $0x228] sm:$0xff] }
  0xad   : >> { %v1067_v33 = vperm.slane %v546_v32, %v1975_v22 }
  0xae   : >> { %v1061_v40 = vsel %vm1060_vm9, %v1059_v31, %v1057_v19  ;;  %v318_v31 = vld [vmem:[%s1743_s26 + $0x200] sm:$0xff] }
  0xaf   : >> { %v1065_v45 = vsel %vm1064_vm10, %v1063_v30, %v1061_v40  ;;  %v317_v30 = vld [vmem:[%s1743_s26 + $0x1f8] sm:$0xff] }
  0xb0   : >> { %v1069_v47 = vsel %vm1068_vm11, %v1067_v33, %v1065_v45  ;;  %674 = vadd.xlane.f32.xlu0 %v673_v37  ;;  %677 = vadd.xlane.f32.xlu1 %v676_v38  ;;  %v319_v33 = vld [vmem:[%s1743_s26 + $0x208] sm:$0xff]  ;;  %v445_v37 = vmul.f32 %v317_v30, %v1903_v29  ;;  %v446_v38 = vmul.f32 %v318_v31, %v2028_v25 }
  0xb1   : >> { %680 = vadd.xlane.f32.xlu2 %v679_v42  ;;  %v447_v40 = vmul.f32 %v319_v33, %v2028_v25 }
  0xb2   : >> { %v700_v51 = vsel %vm510_vm0, %v445_v37, 0.0  ;;  %v703_v52 = vsel %vm510_vm0, %v446_v38, 0.0 }
  0xb3   : >> { %v552_v54 = vpop.xlane.xlu1 %551  ;;  %v549_v55 = vpop.xlane.xlu0 %548  ;;  %v706_v53 = vsel %vm510_vm0, %v447_v40, 0.0 }
  0xb4   : >> { %v1075_v56 = vperm.slane %v552_v54, %v1993_v48  ;;  %v1071_v57 = vperm.slane %v549_v55, %v1996_v49  ;;  %v555_v58 = vpop.xlane.xlu2 %554  ;;  %v320_v54 = vld [vmem:[%s1743_s26 + $0x210] sm:$0xff]  ;;  %v321_v55 = vld [vmem:[%s1743_s26 + $0x218] sm:$0xff] }
  0xb5   : >> { %v1079_v59 = vperm.slane %v555_v58, %v1999_v50 }
  0xb6   : >> { %v1073_v2 = vsel %vm2523_vm12, %v1071_v57, %v1069_v47  ;;  %v322_v57 = vld [vmem:[%s1743_s26 + $0x220] sm:$0xff] }
  0xb7   : >> { %v1077_v6 = vsel %vm2522_vm13, %v1075_v56, %v1073_v2 }
  0xb8   : >> { %v1081_v8 = vsel %vm1080_vm14, %v1079_v59, %v1077_v6  ;;  %683 = vadd.xlane.f32.xlu0 %v682_v62  ;;  %686 = vadd.xlane.f32.xlu1 %v685_v1  ;;  %v448_v59 = vmul.f32 %v320_v54, %v2028_v25  ;;  %v449_v62 = vmul.f32 %v321_v55, %v2028_v25 }
  0xb9   : >> { %689 = vadd.xlane.f32.xlu2 %v688_v3  ;;  %v450_v1 = vmul.f32 %v322_v57, %v2028_v25 }
  0xba   : >> { %v712_v10 = vsel %vm510_vm0, %v449_v62, 0.0 }
  0xbb   : >> { %v558_v14 = vpop.xlane.xlu0 %557  ;;  %v561_v15 = vpop.xlane.xlu1 %560  ;;  %v715_v12 = vsel %vm510_vm0, %v450_v1, 0.0 }
  0xbc   : >> { %v1083_v16 = vperm.slane %v558_v14, %v2017_v9  ;;  %v1086_v17 = vperm.slane %v561_v15, %v1899_v26  ;;  %v564_v18 = vpop.xlane.xlu2 %563  ;;  %v324_v14 = vld [vmem:[%s1743_s26 + $0x230] sm:$0xff] }
  0xbd   : >> { %v1087_v19 = vperm.slane %v564_v18, %v1913_v35  ;;  %v451_v18 = vmul.f32 %v323_v13, %v2028_v25 }
  0xbe   : >> { %v2031_v27 = vsel %vm1084_vm15, %v1083_v16, %v1081_v8  ;;  %v709_v8 = vsel %vm510_vm0, %v448_v59, 0.0  ;;  %v325_v16 = vld [vmem:[%s1743_s26 + $0x238] sm:$0xff] }
  0xbf   : >> { %v1088_v32 = vsel %vm1028_vm1, %v1087_v19, %v1086_v17  ;;  %v452_v19 = vmul.f32 %v324_v14, %v2028_v25  ;;  %v718_v37 = vsel %vm510_vm0, %v451_v18, 0.0 }
  0xc0   : >> { %692 = vadd.xlane.f32.xlu0 %v691_v23  ;;  %695 = vadd.xlane.f32.xlu1 %v694_v24  ;;  %v453_v23 = vmul.f32 %v325_v16, %v2028_v25 }
  0xc1   : >> { %698 = vadd.xlane.f32.xlu2 %v697_v28  ;;  %v721_v38 = vsel %vm510_vm0, %v452_v19, 0.0 }
  0xc3   : >> { %v567_v42 = vpop.xlane.xlu0 %566  ;;  %v570_v43 = vpop.xlane.xlu1 %569 }
  0xc4   : >> { %v1089_v44 = vperm.slane %v567_v42, %v1916_v36  ;;  %v1091_v45 = vperm.slane %v570_v43, %v1910_v34  ;;  %v573_v46 = vpop.xlane.xlu2 %572  ;;  %v724_v42 = vsel %vm510_vm0, %v453_v23, 0.0  ;;  %v326_v43 = vld [vmem:[%s1743_s26 + $0x240] sm:$0xff] }
  0xc5   : >> { %v1093_v47 = vperm.slane %v573_v46, %v1925_v41  ;;  %v328_v46 = vld [vmem:[%s1743_s26 + $0x250] sm:$0xff] }
  0xc6   : >> { %v1090_v29 = vsel %vm1032_vm2, %v1089_v44, %v1088_v32  ;;  %v327_v44 = vld [vmem:[%s1743_s26 + $0x248] sm:$0xff] }
  0xc7   : >> { %v1092_v56 = vsel %vm1036_vm3, %v1091_v45, %v1090_v29  ;;  %v456_v29 = vmul.f32 %v328_v46, %v2028_v25 }
  0xc8   : >> { %v1094_v58 = vsel %vm1040_vm4, %v1093_v47, %v1092_v56  ;;  %701 = vadd.xlane.f32.xlu0 %v700_v51  ;;  %704 = vadd.xlane.f32.xlu1 %v703_v52  ;;  %v454_v51 = vmul.f32 %v326_v43, %v2028_v25  ;;  %v455_v52 = vmul.f32 %v327_v44, %v2028_v25 }
  0xc9   : >> { %707 = vadd.xlane.f32.xlu2 %v706_v53 }
  0xca   : >> { %v727_v59 = vsel %vm510_vm0, %v454_v51, 0.0  ;;  %v730_v62 = vsel %vm510_vm0, %v455_v52, 0.0 }
  0xcb   : >> { %v576_v2 = vpop.xlane.xlu0 %575  ;;  %v579_v3 = vpop.xlane.xlu1 %578 }
  0xcc   : >> { %v1095_v4 = vperm.slane %v576_v2, %v1921_v39  ;;  %v1097_v5 = vperm.slane %v579_v3, %v1946_v61  ;;  %v582_v6 = vpop.xlane.xlu2 %581  ;;  %v733_v2 = vsel %vm510_vm0, %v456_v29, 0.0  ;;  %v329_v3 = vld [vmem:[%s1743_s26 + $0x258] sm:$0xff] }
  0xcd   : >> { %v1099_v7 = vperm.slane %v582_v6, %v1943_v60  ;;  %v331_v6 = vld [vmem:[%s1743_s26 + $0x268] sm:$0xff] }
  0xce   : >> { %v1096_v11 = vsel %vm1044_vm5, %v1095_v4, %v1094_v58  ;;  %v330_v4 = vld [vmem:[%s1743_s26 + $0x260] sm:$0xff] }
  0xcf   : >> { %v1098_v15 = vsel %vm1048_vm6, %v1097_v5, %v1096_v11  ;;  %v459_v11 = vmul.f32 %v331_v6, %v2028_v25 }
  0xd0   : >> { %v1100_v17 = vsel %vm1052_vm7, %v1099_v7, %v1098_v15  ;;  %710 = vadd.xlane.f32.xlu0 %v709_v8  ;;  %713 = vadd.xlane.f32.xlu1 %v712_v10  ;;  %v457_v8 = vmul.f32 %v329_v3, %v2028_v25  ;;  %v458_v10 = vmul.f32 %v330_v4, %v2028_v25 }
  0xd1   : >> { %716 = vadd.xlane.f32.xlu2 %v715_v12  ;;  %v233_v12 = vrot.slane %v1746_v0, 5 }
  0xd2   : >> { %v736_v18 = vsel %vm510_vm0, %v457_v8, 0.0  ;;  %v739_v19 = vsel %vm510_vm0, %v458_v10, 0.0 }
  0xd3   : >> { %v585_v24 = vpop.xlane.xlu0 %584  ;;  %v588_v28 = vpop.xlane.xlu1 %587 }
  0xd4   : >> { %v1101_v30 = vperm.slane %v585_v24, %v1950_v63  ;;  %v1103_v31 = vperm.slane %v588_v28, %v1972_v21  ;;  %v591_v32 = vpop.xlane.xlu2 %590  ;;  %v742_v24 = vsel %vm510_vm0, %v459_v11, 0.0  ;;  %v332_v28 = vld [vmem:[%s1743_s26 + $0x270] sm:$0xff] }
  0xd5   : >> { %v1105_v33 = vperm.slane %v591_v32, %v1969_v20  ;;  %v334_v32 = vld [vmem:[%s1743_s26 + $0x280] sm:$0xff] }
  0xd6   : >> { %v1102_v40 = vsel %vm1056_vm8, %v1101_v30, %v1100_v17  ;;  %v333_v30 = vld [vmem:[%s1743_s26 + $0x278] sm:$0xff] }
  0xd7   : >> { %v1104_v45 = vsel %vm1060_vm9, %v1103_v31, %v1102_v40  ;;  %v2110_v31 = vperm.slane %v233_v12, 0  ;;  %v338_v12 = vld [vmem:[%s1743_s26 + $0x2a0] sm:$0xff] }
  0xd8   : >> { %v1106_v47 = vsel %vm1064_vm10, %v1105_v33, %v1104_v45  ;;  %719 = vadd.xlane.f32.xlu0 %v718_v37  ;;  %722 = vadd.xlane.f32.xlu1 %v721_v38  ;;  %v460_v37 = vmul.f32 %v332_v28, %v2028_v25  ;;  %v461_v38 = vmul.f32 %v333_v30, %v2028_v25 }
  0xd9   : >> { %725 = vadd.xlane.f32.xlu2 %v724_v42  ;;  %v462_v42 = vmul.f32 %v334_v32, %v2110_v31 }
  0xda   : >> { %v745_v51 = vsel %vm510_vm0, %v460_v37, 0.0  ;;  %v748_v52 = vsel %vm510_vm0, %v461_v38, 0.0 }
  0xdb   : >> { %v594_v53 = vpop.xlane.xlu0 %593  ;;  %v597_v54 = vpop.xlane.xlu1 %596  ;;  %v751_v29 = vsel %vm510_vm0, %v462_v42, 0.0 }
  0xdc   : >> { %v1107_v55 = vperm.slane %v594_v53, %v1975_v22  ;;  %v1109_v56 = vperm.slane %v597_v54, %v1996_v49  ;;  %v600_v57 = vpop.xlane.xlu2 %599  ;;  %v335_v53 = vld [vmem:[%s1743_s26 + $0x288] sm:$0xff]  ;;  %v336_v54 = vld [vmem:[%s1743_s26 + $0x290] sm:$0xff] }
  0xdd   : >> { %v1111_v58 = vperm.slane %v600_v57, %v1993_v48 }
  0xde   : >> { %v1108_v1 = vsel %vm1068_vm11, %v1107_v55, %v1106_v47 }
  0xdf   : >> { %v1110_v5 = vsel %vm2523_vm12, %v1109_v56, %v1108_v1  ;;  %v337_v56 = vld [vmem:[%s1743_s26 + $0x298] sm:$0xff] }
  0xe0   : >> { %v1112_v7 = vsel %vm2522_vm13, %v1111_v58, %v1110_v5  ;;  %728 = vadd.xlane.f32.xlu0 %v727_v59  ;;  %731 = vadd.xlane.f32.xlu1 %v730_v62  ;;  %vm1303_vm13 = vcmask 1041409   ;;  %v463_v58 = vmul.f32 %v335_v53, %v2110_v31  ;;  %v464_v59 = vmul.f32 %v336_v54, %v2110_v31 }
  0xe1   : >> { %734 = vadd.xlane.f32.xlu2 %v733_v2  ;;  %v465_v62 = vmul.f32 %v337_v56, %v2110_v31 }
  0xe2   : >> { %v757_v8 = vsel %vm510_vm0, %v464_v59, 0.0 }
  0xe3   : >> { %v603_v13 = vpop.xlane.xlu0 %602  ;;  %v606_v14 = vpop.xlane.xlu1 %605  ;;  %v760_v11 = vsel %vm510_vm0, %v465_v62, 0.0 }
  0xe4   : >> { %v1113_v15 = vperm.slane %v603_v13, %v1999_v50  ;;  %v1115_v16 = vperm.slane %v606_v14, %v2017_v9  ;;  %v609_v17 = vpop.xlane.xlu2 %608  ;;  %v339_v13 = vld [vmem:[%s1743_s26 + $0x2a8] sm:$0xff] }
  0xe5   : >> { %v1117_v40 = vperm.slane %v609_v17, %v1899_v26  ;;  %v466_v17 = vmul.f32 %v338_v12, %v2110_v31 }
  0xe6   : >> { %v1114_v23 = vsel %vm1080_vm14, %v1113_v15, %v1112_v7  ;;  %v754_v7 = vsel %vm510_vm0, %v463_v58, 0.0  ;;  %v340_v15 = vld [vmem:[%s1743_s26 + $0x2b0] sm:$0xff] }
  0xe7   : >> { %v1116_v0 = vsel %vm1084_vm15, %v1115_v16, %v1114_v23  ;;  %v763_v37 = vsel %vm510_vm0, %v466_v17, 0.0 }
  0xe8   : >> { %v2115_v33 = vsel %vm1303_vm13, %v1116_v0, %v2031_v27  ;;  %737 = vadd.xlane.f32.xlu0 %v736_v18  ;;  %740 = vadd.xlane.f32.xlu1 %v739_v19  ;;  %v467_v18 = vmul.f32 %v339_v13, %v2110_v31  ;;  %v468_v19 = vmul.f32 %v340_v15, %v2110_v31  ;;  %vm2526_vm13 = vcmask 917312  }
  0xe9   : >> { %743 = vadd.xlane.f32.xlu2 %v742_v24 }
  0xea   : >> { %v766_v38 = vsel %vm510_vm0, %v467_v18, 0.0  ;;  %v769_v42 = vsel %vm510_vm0, %v468_v19, 0.0 }
  0xeb   : >> { %v612_v43 = vpop.xlane.xlu0 %611  ;;  %v615_v44 = vpop.xlane.xlu1 %614 }
  0xec   : >> { %v1118_v45 = vperm.slane %v612_v43, %v1913_v35  ;;  %v1120_v27 = vperm.slane %v615_v44, %v1916_v36  ;;  %v618_v46 = vpop.xlane.xlu2 %617  ;;  %v341_v43 = vld [vmem:[%s1743_s26 + $0x2b8] sm:$0xff]  ;;  %v342_v44 = vld [vmem:[%s1743_s26 + $0x2c0] sm:$0xff] }
  0xed   : >> { %v1122_v47 = vperm.slane %v618_v46, %v1910_v34 }
  0xee   : >> { %v1119_v25 = vsel %vm1028_vm1, %v1118_v45, %v1117_v40 }
  0xef   : >> { %v1121_v55 = vsel %vm1032_vm2, %v1120_v27, %v1119_v25  ;;  %v343_v27 = vld [vmem:[%s1743_s26 + $0x2c8] sm:$0xff] }
  0xf0   : >> { %v1123_v57 = vsel %vm1036_vm3, %v1122_v47, %v1121_v55  ;;  %746 = vadd.xlane.f32.xlu0 %v745_v51  ;;  %749 = vadd.xlane.f32.xlu1 %v748_v52  ;;  %v469_v47 = vmul.f32 %v341_v43, %v2110_v31  ;;  %v470_v51 = vmul.f32 %v342_v44, %v2110_v31 }
  0xf1   : >> { %752 = vadd.xlane.f32.xlu2 %v751_v29  ;;  %v471_v52 = vmul.f32 %v343_v27, %v2110_v31 }
  0xf2   : >> { %v775_v58 = vsel %vm510_vm0, %v470_v51, 0.0 }
  0xf3   : >> { %v621_v1 = vpop.xlane.xlu0 %620  ;;  %v624_v2 = vpop.xlane.xlu1 %623  ;;  %v778_v62 = vsel %vm510_vm0, %v471_v52, 0.0 }
  0xf4   : >> { %v1124_v3 = vperm.slane %v621_v1, %v1925_v41  ;;  %v1126_v4 = vperm.slane %v624_v2, %v1921_v39  ;;  %v627_v5 = vpop.xlane.xlu2 %626  ;;  %v344_v1 = vld [vmem:[%s1743_s26 + $0x2d0] sm:$0xff]  ;;  %v345_v2 = vld [vmem:[%s1743_s26 + $0x2d8] sm:$0xff] }
  0xf5   : >> { %v1128_v6 = vperm.slane %v627_v5, %v1946_v61 }
  0xf6   : >> { %v1125_v10 = vsel %vm1040_vm4, %v1124_v3, %v1123_v57  ;;  %v772_v57 = vsel %vm510_vm0, %v469_v47, 0.0 }
  0xf7   : >> { %v1127_v14 = vsel %vm1044_vm5, %v1126_v4, %v1125_v10  ;;  %v346_v4 = vld [vmem:[%s1743_s26 + $0x2e0] sm:$0xff] }
  0xf8   : >> { %v1129_v16 = vsel %vm1048_vm6, %v1128_v6, %v1127_v14  ;;  %755 = vadd.xlane.f32.xlu0 %v754_v7  ;;  %758 = vadd.xlane.f32.xlu1 %v757_v8  ;;  %v472_v6 = vmul.f32 %v344_v1, %v2110_v31  ;;  %v473_v7 = vmul.f32 %v345_v2, %v2110_v31 }
  0xf9   : >> { %761 = vadd.xlane.f32.xlu2 %v760_v11  ;;  %v474_v8 = vmul.f32 %v346_v4, %v2110_v31 }
  0xfa   : >> { %v784_v17 = vsel %vm510_vm0, %v473_v7, 0.0 }
  0xfb   : >> { %v630_v23 = vpop.xlane.xlu0 %629  ;;  %v633_v24 = vpop.xlane.xlu1 %632  ;;  %v787_v19 = vsel %vm510_vm0, %v474_v8, 0.0 }
  0xfc   : >> { %v1130_v28 = vperm.slane %v630_v23, %v1943_v60  ;;  %v1132_v30 = vperm.slane %v633_v24, %v1950_v63  ;;  %v636_v0 = vpop.xlane.xlu2 %635  ;;  %v347_v23 = vld [vmem:[%s1743_s26 + $0x2e8] sm:$0xff]  ;;  %v348_v24 = vld [vmem:[%s1743_s26 + $0x2f0] sm:$0xff] }
  0xfd   : >> { %v1134_v32 = vperm.slane %v636_v0, %v1972_v21 }
  0xfe   : >> { %v1131_v40 = vsel %vm1052_vm7, %v1130_v28, %v1129_v16  ;;  %v781_v16 = vsel %vm510_vm0, %v472_v6, 0.0 }
  0xff   : >> { %v1133_v45 = vsel %vm1056_vm8, %v1132_v30, %v1131_v40  ;;  %v349_v30 = vld [vmem:[%s1743_s26 + $0x2f8] sm:$0xff]  ;;  %v2199_v40 = vld [vmem:[%s1740_s28] sm:$0xff] }
 0x100   : >> { %v1135_v46 = vsel %vm1060_vm9, %v1134_v32, %v1133_v45  ;;  %764 = vadd.xlane.f32.xlu0 %v763_v37  ;;  %767 = vadd.xlane.f32.xlu1 %v766_v38  ;;  %v475_v37 = vmul.f32 %v347_v23, %v2110_v31  ;;  %v476_v38 = vmul.f32 %v348_v24, %v2110_v31 }
 0x101   : >> { %770 = vadd.xlane.f32.xlu2 %v769_v42  ;;  %v234_v42 = vrot.slane %v2199_v40, 6  ;;  %v477_v43 = vmul.f32 %v349_v30, %v2110_v31  ;;  %v350_v31 = vld [vmem:[%s1743_s26 + $0x300] sm:$0xff] }
 0x102   : >> { %v790_v51 = vsel %vm510_vm0, %v475_v37, 0.0  ;;  %v793_v52 = vsel %vm510_vm0, %v476_v38, 0.0 }
 0x103   : >> { %v639_v25 = vpop.xlane.xlu0 %638  ;;  %v642_v29 = vpop.xlane.xlu1 %641 }
 0x104   : >> { %v1136_v53 = vperm.slane %v639_v25, %v1969_v20  ;;  %v1138_v54 = vperm.slane %v642_v29, %v1975_v22  ;;  %v645_v55 = vpop.xlane.xlu2 %644  ;;  %v2208_v25 = vperm.slane %v234_v42, 0 }
 0x105   : >> { %v1140_v56 = vperm.slane %v645_v55, %v1996_v49 }
 0x106   : >> { %v1137_v59 = vsel %vm1064_vm10, %v1136_v53, %v1135_v46  ;;  %v796_v53 = vsel %vm510_vm0, %v477_v43, 0.0 }
 0x107   : >> { %v1139_v3 = vsel %vm1068_vm11, %v1138_v54, %v1137_v59  ;;  %v351_v54 = vld [vmem:[%s1743_s26 + $0x308] sm:$0xff] }
 0x108   : >> { %v1141_v5 = vsel %vm2523_vm12, %v1140_v56, %v1139_v3  ;;  %773 = vadd.xlane.f32.xlu0 %v772_v57  ;;  %776 = vadd.xlane.f32.xlu1 %v775_v58  ;;  %vm1305_vm12 = vcmask 1042434   ;;  %v352_v56 = vld [vmem:[%s1743_s26 + $0x310] sm:$0xff]  ;;  %v478_v57 = vmul.f32 %v350_v31, %v2208_v25  ;;  %v479_v58 = vmul.f32 %v351_v54, %v2208_v25 }
 0x109   : >> { %779 = vadd.xlane.f32.xlu2 %v778_v62  ;;  %v480_v59 = vmul.f32 %v352_v56, %v2208_v25 }
 0x10a   : >> { %v799_v6 = vsel %vm510_vm0, %v478_v57, 0.0  ;;  %v802_v7 = vsel %vm510_vm0, %v479_v58, 0.0 }
 0x10b   : >> { %v648_v10 = vpop.xlane.xlu0 %647  ;;  %v651_v11 = vpop.xlane.xlu1 %650 }
 0x10c   : >> { %v1142_v12 = vperm.slane %v648_v10, %v1993_v48  ;;  %v1144_v13 = vperm.slane %v651_v11, %v1999_v50  ;;  %v654_v14 = vpop.xlane.xlu2 %653  ;;  %v805_v10 = vsel %vm510_vm0, %v480_v59, 0.0  ;;  %v353_v11 = vld [vmem:[%s1743_s26 + $0x318] sm:$0xff] }
 0x10d   : >> { %v1146_v15 = vperm.slane %v654_v14, %v2017_v9  ;;  %v355_v14 = vld [vmem:[%s1743_s26 + $0x328] sm:$0xff] }
 0x10e   : >> { %v1143_v18 = vsel %vm2526_vm13, %v1142_v12, %v1141_v5  ;;  %v354_v12 = vld [vmem:[%s1743_s26 + $0x320] sm:$0xff] }
 0x10f   : >> { %v1145_v28 = vsel %vm1080_vm14, %v1144_v13, %v1143_v18  ;;  %v483_v18 = vmul.f32 %v355_v14, %v2208_v25 }
 0x110   : >> { %v1147_v0 = vsel %vm1084_vm15, %v1146_v15, %v1145_v28  ;;  %782 = vadd.xlane.f32.xlu0 %v781_v16  ;;  %785 = vadd.xlane.f32.xlu1 %v784_v17  ;;  %v481_v16 = vmul.f32 %v353_v11, %v2208_v25  ;;  %v482_v17 = vmul.f32 %v354_v12, %v2208_v25 }
 0x111   : >> { %v2194_v32 = vsel %vm1305_vm12, %v1147_v0, %v2115_v33  ;;  %788 = vadd.xlane.f32.xlu2 %v787_v19  ;;  %v814_v43 = vsel %vm510_vm0, %v483_v18, 0.0  ;;  %vm2527_vm12 = vcmask 851712  }
 0x112   : >> { %v808_v37 = vsel %vm510_vm0, %v481_v16, 0.0  ;;  %v811_v38 = vsel %vm510_vm0, %v482_v17, 0.0 }
 0x113   : >> { %v657_v44 = vpop.xlane.xlu0 %656  ;;  %v660_v45 = vpop.xlane.xlu1 %659 }
 0x114   : >> { %v1148_v27 = vperm.slane %v657_v44, %v1899_v26  ;;  %v1149_v33 = vperm.slane %v660_v45, %v1913_v35  ;;  %v663_v46 = vpop.xlane.xlu2 %662  ;;  %v356_v44 = vld [vmem:[%s1743_s26 + $0x330] sm:$0xff]  ;;  %v357_v45 = vld [vmem:[%s1743_s26 + $0x338] sm:$0xff] }
 0x115   : >> { %v1151_v47 = vperm.slane %v663_v46, %v1916_v36 }
 0x116   : >> { %v1150_v29 = vsel %vm1028_vm1, %v1149_v33, %v1148_v27  ;;  %v358_v33 = vld [vmem:[%s1743_s26 + $0x340] sm:$0xff] }
 0x117   : >> { %v1152_v55 = vsel %vm1032_vm2, %v1151_v47, %v1150_v29  ;;  %v484_v47 = vmul.f32 %v356_v44, %v2208_v25 }
 0x118   : >> { %791 = vadd.xlane.f32.xlu0 %v790_v51  ;;  %794 = vadd.xlane.f32.xlu1 %v793_v52  ;;  %v485_v51 = vmul.f32 %v357_v45, %v2208_v25  ;;  %v486_v52 = vmul.f32 %v358_v33, %v2208_v25 }
 0x119   : >> { %797 = vadd.xlane.f32.xlu2 %v796_v53  ;;  %v817_v57 = vsel %vm510_vm0, %v484_v47, 0.0 }
 0x11a   : >> { %v820_v58 = vsel %vm510_vm0, %v485_v51, 0.0 }
 0x11b   : >> { %v666_v62 = vpop.xlane.xlu0 %665  ;;  %v669_v1 = vpop.xlane.xlu1 %668 }
 0x11c   : >> { %v1153_v2 = vperm.slane %v666_v62, %v1910_v34  ;;  %v1155_v3 = vperm.slane %v669_v1, %v1925_v41  ;;  %v672_v4 = vpop.xlane.xlu2 %671  ;;  %v823_v62 = vsel %vm510_vm0, %v486_v52, 0.0  ;;  %v359_v1 = vld [vmem:[%s1743_s26 + $0x348] sm:$0xff] }
 0x11d   : >> { %v1157_v5 = vperm.slane %v672_v4, %v1921_v39  ;;  %v361_v4 = vld [vmem:[%s1743_s26 + $0x358] sm:$0xff] }
 0x11e   : >> { %v1154_v8 = vsel %vm1036_vm3, %v1153_v2, %v1152_v55  ;;  %v360_v2 = vld [vmem:[%s1743_s26 + $0x350] sm:$0xff] }
 0x11f   : >> { %v1156_v13 = vsel %vm1040_vm4, %v1155_v3, %v1154_v8  ;;  %v235_v8 = vrot.slane %v2199_v40, 7 }
 0x120   : >> { %v1158_v15 = vsel %vm1044_vm5, %v1157_v5, %v1156_v13  ;;  %800 = vadd.xlane.f32.xlu0 %v799_v6  ;;  %803 = vadd.xlane.f32.xlu1 %v802_v7  ;;  %v487_v6 = vmul.f32 %v359_v1, %v2208_v25  ;;  %v488_v7 = vmul.f32 %v360_v2, %v2208_v25 }
 0x121   : >> { %806 = vadd.xlane.f32.xlu2 %v805_v10  ;;  %v489_v10 = vmul.f32 %v361_v4, %v2208_v25 }
 0x122   : >> { %v826_v17 = vsel %vm510_vm0, %v487_v6, 0.0  ;;  %v829_v18 = vsel %vm510_vm0, %v488_v7, 0.0 }
 0x123   : >> { %v675_v19 = vpop.xlane.xlu0 %674  ;;  %v678_v23 = vpop.xlane.xlu1 %677 }
 0x124   : >> { %v1159_v24 = vperm.slane %v675_v19, %v1946_v61  ;;  %v1161_v28 = vperm.slane %v678_v23, %v1943_v60  ;;  %v681_v30 = vpop.xlane.xlu2 %680  ;;  %v2270_v19 = vperm.slane %v235_v8, 0  ;;  %v832_v23 = vsel %vm510_vm0, %v489_v10, 0.0 }
 0x125   : >> { %v1163_v0 = vperm.slane %v681_v30, %v1950_v63 }
 0x126   : >> { %v1160_v42 = vsel %vm1048_vm6, %v1159_v24, %v1158_v15  ;;  %v362_v24 = vld [vmem:[%s1743_s26 + $0x360] sm:$0xff] }
 0x127   : >> { %v1162_v27 = vsel %vm1052_vm7, %v1161_v28, %v1160_v42  ;;  %v366_v28 = vld [vmem:[%s1743_s26 + $0x380] sm:$0xff] }
 0x128   : >> { %v1164_v46 = vsel %vm1056_vm8, %v1163_v0, %v1162_v27  ;;  %809 = vadd.xlane.f32.xlu0 %v808_v37  ;;  %812 = vadd.xlane.f32.xlu1 %v811_v38  ;;  %v367_v0 = vld [vmem:[%s1743_s26 + $0x388] sm:$0xff]  ;;  %v490_v38 = vmul.f32 %v362_v24, %v2208_v25  ;;  %v494_v42 = vmul.f32 %v366_v28, %v2270_v19 }
 0x129   : >> { %815 = vadd.xlane.f32.xlu2 %v814_v43  ;;  %v495_v43 = vmul.f32 %v367_v0, %v2270_v19 }
 0x12a   : >> { %v835_v51 = vsel %vm510_vm0, %v490_v38, 0.0  ;;  %v847_v52 = vsel %vm510_vm0, %v494_v42, 0.0 }
 0x12b   : >> { %v684_v29 = vpop.xlane.xlu0 %683  ;;  %v687_v53 = vpop.xlane.xlu1 %686 }
 0x12c   : >> { %v1165_v31 = vperm.slane %v684_v29, %v1972_v21  ;;  %v1167_v54 = vperm.slane %v687_v53, %v1969_v20  ;;  %v690_v55 = vpop.xlane.xlu2 %689  ;;  %v850_v53 = vsel %vm510_vm0, %v495_v43, 0.0 }
 0x12d   : >> { %v1169_v56 = vperm.slane %v690_v55, %v1975_v22 }
 0x12e   : >> { %v1166_v59 = vsel %vm1060_vm9, %v1165_v31, %v1164_v46  ;;  %v368_v31 = vld [vmem:[%s1743_s26 + $0x390] sm:$0xff] }
 0x12f   : >> { %v1168_v3 = vsel %vm1064_vm10, %v1167_v54, %v1166_v59  ;;  %v369_v54 = vld [vmem:[%s1743_s26 + $0x398] sm:$0xff] }
 0x130   : >> { %v1170_v5 = vsel %vm1068_vm11, %v1169_v56, %v1168_v3  ;;  %818 = vadd.xlane.f32.xlu0 %v817_v57  ;;  %821 = vadd.xlane.f32.xlu1 %v820_v58  ;;  %v370_v57 = vld [vmem:[%s1743_s26 + $0x3a0] sm:$0xff]  ;;  %v496_v58 = vmul.f32 %v368_v31, %v2270_v19  ;;  %v497_v59 = vmul.f32 %v369_v54, %v2270_v19 }
 0x131   : >> { %824 = vadd.xlane.f32.xlu2 %v823_v62  ;;  %v498_v62 = vmul.f32 %v370_v57, %v2270_v19 }
 0x132   : >> { %v853_v6 = vsel %vm510_vm0, %v496_v58, 0.0  ;;  %v856_v7 = vsel %vm510_vm0, %v497_v59, 0.0 }
 0x133   : >> { %v693_v11 = vpop.xlane.xlu0 %692  ;;  %v696_v12 = vpop.xlane.xlu1 %695  ;;  %v859_v10 = vsel %vm510_vm0, %v498_v62, 0.0 }
 0x134   : >> { %v1171_v13 = vperm.slane %v693_v11, %v1996_v49  ;;  %v1173_v14 = vperm.slane %v696_v12, %v1993_v48  ;;  %v699_v15 = vpop.xlane.xlu2 %698  ;;  %v371_v11 = vld [vmem:[%s1743_s26 + $0x3a8] sm:$0xff]  ;;  %v372_v12 = vld [vmem:[%s1743_s26 + $0x3b0] sm:$0xff] }
 0x135   : >> { %v1175_v16 = vperm.slane %v699_v15, %v1999_v50 }
 0x136   : >> { %v1172_v40 = vsel %vm2527_vm12, %v1171_v13, %v1170_v5  ;;  %vm1307_vm12 = vcmask 1043459  }
 0x137   : >> { %v1174_v30 = vsel %vm2526_vm13, %v1173_v14, %v1172_v40  ;;  %v373_v14 = vld [vmem:[%s1743_s26 + $0x3b8] sm:$0xff]  ;;  %vm2528_vm13 = vcmask 851712  }
 0x138   : >> { %v1176_v37 = vsel %vm1080_vm14, %v1175_v16, %v1174_v30  ;;  %827 = vadd.xlane.f32.xlu0 %v826_v17  ;;  %830 = vadd.xlane.f32.xlu1 %v829_v18  ;;  %v499_v16 = vmul.f32 %v371_v11, %v2270_v19  ;;  %v500_v17 = vmul.f32 %v372_v12, %v2270_v19 }
 0x139   : >> { %833 = vadd.xlane.f32.xlu2 %v832_v23  ;;  %v501_v18 = vmul.f32 %v373_v14, %v2270_v19 }
 0x13a   : >> { %v865_v38 = vsel %vm510_vm0, %v500_v17, 0.0 }
 0x13b   : >> { %v702_v44 = vpop.xlane.xlu0 %701  ;;  %v705_v45 = vpop.xlane.xlu1 %704  ;;  %v868_v43 = vsel %vm510_vm0, %v501_v18, 0.0 }
 0x13c   : >> { %v1177_v27 = vperm.slane %v702_v44, %v2017_v9  ;;  %v1179_v33 = vperm.slane %v705_v45, %v1899_v26  ;;  %v708_v46 = vpop.xlane.xlu2 %707  ;;  %v374_v44 = vld [vmem:[%s1743_s26 + $0x3c0] sm:$0xff]  ;;  %v375_v45 = vld [vmem:[%s1743_s26 + $0x3c8] sm:$0xff] }
 0x13d   : >> { %v1180_v47 = vperm.slane %v708_v46, %v1913_v35 }
 0x13e   : >> { %v1178_v29 = vsel %vm1084_vm15, %v1177_v27, %v1176_v37  ;;  %v862_v37 = vsel %vm510_vm0, %v499_v16, 0.0 }
 0x13f   : >> { %v2292_v55 = vsel %vm1307_vm12, %v1178_v29, %v2194_v32  ;;  %v1181_v56 = vsel %vm1028_vm1, %v1180_v47, %v1179_v33  ;;  %v376_v33 = vld [vmem:[%s1743_s26 + $0x3d0] sm:$0xff]  ;;  %v502_v47 = vmul.f32 %v374_v44, %v2270_v19  ;;  %vm2529_vm12 = vcmask 917312  }
 0x140   : >> { %836 = vadd.xlane.f32.xlu0 %v835_v51  ;;  %848 = vadd.xlane.f32.xlu1 %v847_v52  ;;  %v503_v51 = vmul.f32 %v375_v45, %v2270_v19  ;;  %v504_v52 = vmul.f32 %v376_v33, %v2270_v19 }
 0x141   : >> { %851 = vadd.xlane.f32.xlu2 %v850_v53  ;;  %v871_v58 = vsel %vm510_vm0, %v502_v47, 0.0 }
 0x142   : >> { %v874_v59 = vsel %vm510_vm0, %v503_v51, 0.0 }
 0x143   : >> { %v711_v1 = vpop.xlane.xlu0 %710  ;;  %v714_v2 = vpop.xlane.xlu1 %713 }
 0x144   : >> { %v1182_v32 = vperm.slane %v711_v1, %v1916_v36  ;;  %v1184_v3 = vperm.slane %v714_v2, %v1910_v34  ;;  %v717_v4 = vpop.xlane.xlu2 %716  ;;  %v877_v1 = vsel %vm510_vm0, %v504_v52, 0.0  ;;  %v377_v2 = vld [vmem:[%s1743_s26 + $0x3d8] sm:$0xff] }
 0x145   : >> { %v1186_v5 = vperm.slane %v717_v4, %v1925_v41  ;;  %v378_v4 = vld [vmem:[%s1743_s26 + $0x3e0] sm:$0xff] }
 0x146   : >> { %v1183_v8 = vsel %vm1032_vm2, %v1182_v32, %v1181_v56  ;;  %v363_v32 = vld [vmem:[%s1743_s26 + $0x368] sm:$0xff] }
 0x147   : >> { %v1185_v13 = vsel %vm1036_vm3, %v1184_v3, %v1183_v8  ;;  %v506_v8 = vmul.f32 %v378_v4, %v2270_v19 }
 0x148   : >> { %v1187_v15 = vsel %vm1040_vm4, %v1186_v5, %v1185_v13  ;;  %854 = vadd.xlane.f32.xlu0 %v853_v6  ;;  %857 = vadd.xlane.f32.xlu1 %v856_v7  ;;  %v505_v6 = vmul.f32 %v377_v2, %v2270_v19  ;;  %v491_v7 = vmul.f32 %v363_v32, %v2208_v25 }
 0x149   : >> { %860 = vadd.xlane.f32.xlu2 %v859_v10 }
 0x14a   : >> { %v880_v16 = vsel %vm510_vm0, %v505_v6, 0.0  ;;  %v838_v17 = vsel %vm510_vm0, %v491_v7, 0.0 }
 0x14b   : >> { %v720_v40 = vpop.xlane.xlu0 %719  ;;  %v723_v23 = vpop.xlane.xlu1 %722 }
 0x14c   : >> { %v1188_v24 = vperm.slane %v720_v40, %v1921_v39  ;;  %v1190_v28 = vperm.slane %v723_v23, %v1946_v61  ;;  %v726_v30 = vpop.xlane.xlu2 %725  ;;  %v883_v40 = vsel %vm510_vm0, %v506_v8, 0.0  ;;  %v364_v23 = vld [vmem:[%s1743_s26 + $0x370] sm:$0xff] }
 0x14d   : >> { %v1192_v0 = vperm.slane %v726_v30, %v1943_v60  ;;  %v365_v30 = vld [vmem:[%s1743_s26 + $0x378] sm:$0xff] }
 0x14e   : >> { %v1189_v42 = vsel %vm1044_vm5, %v1188_v24, %v1187_v15  ;;  %v379_v24 = vld [vmem:[%s1743_s26 + $0x3e8] sm:$0xff] }
 0x14f   : >> { %v1191_v27 = vsel %vm1048_vm6, %v1190_v28, %v1189_v42  ;;  %v493_v42 = vmul.f32 %v365_v30, %v2208_v25 }
 0x150   : >> { %v1193_v46 = vsel %vm1052_vm7, %v1192_v0, %v1191_v27  ;;  %863 = vadd.xlane.f32.xlu0 %v862_v37  ;;  %866 = vadd.xlane.f32.xlu1 %v865_v38  ;;  %v492_v37 = vmul.f32 %v364_v23, %v2208_v25  ;;  %v507_v38 = vmul.f32 %v379_v24, %v2270_v19 }
 0x151   : >> { %869 = vadd.xlane.f32.xlu2 %v868_v43  ;;  %v844_v52 = vsel %vm510_vm0, %v493_v42, 0.0 }
 0x152   : >> { %v886_v47 = vsel %vm510_vm0, %v507_v38, 0.0 }
 0x153   : >> { %v729_v29 = vpop.xlane.xlu0 %728  ;;  %v732_v53 = vpop.xlane.xlu1 %731 }
 0x154   : >> { %v1194_v31 = vperm.slane %v729_v29, %v1950_v63  ;;  %v1196_v54 = vperm.slane %v732_v53, %v1972_v21  ;;  %v735_v56 = vpop.xlane.xlu2 %734  ;;  %v380_v29 = vld [vmem:[%s1743_s26 + $0x3f0] sm:$0xff]  ;;  %v381_v53 = vld [vmem:[%s1743_s26 + $0x3f8] sm:$0xff] }
 0x155   : >> { %v1198_v57 = vperm.slane %v735_v56, %v1969_v20  ;;  %v509_v56 = vmul.f32 %v381_v53, %v2270_v19 }
 0x156   : >> { %v1195_v62 = vsel %vm1056_vm8, %v1194_v31, %v1193_v46  ;;  %v841_v46 = vsel %vm510_vm0, %v492_v37, 0.0 }
 0x157   : >> { %v1197_v3 = vsel %vm1060_vm9, %v1196_v54, %v1195_v62  ;;  %v508_v54 = vmul.f32 %v380_v29, %v2270_v19 }
 0x158   : >> { %v1199_v5 = vsel %vm1064_vm10, %v1198_v57, %v1197_v3  ;;  %872 = vadd.xlane.f32.xlu0 %v871_v58  ;;  %875 = vadd.xlane.f32.xlu1 %v874_v59  ;;  %v892_v3 = vsel %vm510_vm0, %v509_v56, 0.0 }
 0x159   : >> { %878 = vadd.xlane.f32.xlu2 %v877_v1 }
 0x15b   : >> { %v738_v10 = vpop.xlane.xlu0 %737  ;;  %v741_v11 = vpop.xlane.xlu1 %740 }
 0x15c   : >> { %v1200_v12 = vperm.slane %v738_v10, %v1975_v22  ;;  %v1202_v13 = vperm.slane %v741_v11, %v1996_v49  ;;  %v744_v14 = vpop.xlane.xlu2 %743 }
 0x15d   : >> { %v1204_v15 = vperm.slane %v744_v14, %v1993_v48 }
 0x15e   : >> { %v1201_v18 = vsel %vm1068_vm11, %v1200_v12, %v1199_v5 }
 0x15f   : >> { %v1203_v28 = vsel %vm2528_vm13, %v1202_v13, %v1201_v18  ;;  %vm1309_vm13 = vcmask 1044484  }
 0x160   : >> { %v1205_v0 = vsel %vm2529_vm12, %v1204_v15, %v1203_v28  ;;  %881 = vadd.xlane.f32.xlu0 %v880_v16  ;;  %839 = vadd.xlane.f32.xlu1 %v838_v17 }
 0x161   : >> { %884 = vadd.xlane.f32.xlu2 %v883_v40 }
 0x163   : >> { %v747_v43 = vpop.xlane.xlu0 %746  ;;  %v750_v44 = vpop.xlane.xlu1 %749 }
 0x164   : >> { %v1206_v45 = vperm.slane %v747_v43, %v1999_v50  ;;  %v1208_v27 = vperm.slane %v750_v44, %v2017_v9  ;;  %v753_v33 = vpop.xlane.xlu2 %752 }
 0x165   : >> { %v1210_v57 = vperm.slane %v753_v33, %v1899_v26 }
 0x166   : >> { %v1207_v51 = vsel %vm1080_vm14, %v1206_v45, %v1205_v0 }
 0x167   : >> { %v1209_v25 = vsel %vm1084_vm15, %v1208_v27, %v1207_v51 }
 0x168   : >> { %v1310_v31 = vsel %vm1309_vm13, %v1209_v25, %v2292_v55  ;;  %842 = vadd.xlane.f32.xlu0 %v841_v46  ;;  %887 = vadd.xlane.f32.xlu1 %v886_v47  ;;  %v889_v55 = vsel %vm510_vm0, %v508_v54, 0.0  ;;  %vm2530_vm0 = vcmask 851712   ;;  %vm1311_vm13 = vcmask 1045509  }
 0x169   : >> { %845 = vadd.xlane.f32.xlu2 %v844_v52 }
 0x16b   : >> { %v756_v58 = vpop.xlane.xlu0 %755  ;;  %v759_v59 = vpop.xlane.xlu1 %758 }
 0x16c   : >> { %v1211_v62 = vperm.slane %v756_v58, %v1913_v35  ;;  %v1213_v1 = vperm.slane %v759_v59, %v1916_v36  ;;  %v762_v2 = vpop.xlane.xlu2 %761 }
 0x16d   : >> { %v1215_v32 = vperm.slane %v762_v2, %v1910_v34 }
 0x16e   : >> { %v1212_v4 = vsel %vm1028_vm1, %v1211_v62, %v1210_v57 }
 0x16f   : >> { %v1214_v5 = vsel %vm1032_vm2, %v1213_v1, %v1212_v4 }
 0x170   : >> { %v1216_v19 = vsel %vm1036_vm3, %v1215_v32, %v1214_v5  ;;  %890 = vadd.xlane.f32.xlu0 %v889_v55  ;;  %893 = vadd.xlane.f32.xlu1 %v892_v3 }
 0x173   : >> { %v765_v6 = vpop.xlane.xlu0 %764  ;;  %v768_v7 = vpop.xlane.xlu1 %767 }
 0x174   : >> { %v1217_v8 = vperm.slane %v765_v6, %v1925_v41  ;;  %v1219_v10 = vperm.slane %v768_v7, %v1921_v39  ;;  %v771_v11 = vpop.xlane.xlu2 %770 }
 0x175   : >> { %v1221_v12 = vperm.slane %v771_v11, %v1946_v61 }
 0x176   : >> { %v1218_v13 = vsel %vm1040_vm4, %v1217_v8, %v1216_v19 }
 0x177   : >> { %v1220_v14 = vsel %vm1044_vm5, %v1219_v10, %v1218_v13 }
 0x178   : >> { %v1222_v15 = vsel %vm1048_vm6, %v1221_v12, %v1220_v14 }
 0x17b   : >> { %v774_v16 = vpop.xlane.xlu0 %773  ;;  %v777_v17 = vpop.xlane.xlu1 %776 }
 0x17c   : >> { %v1223_v18 = vperm.slane %v774_v16, %v1943_v60  ;;  %v1225_v40 = vperm.slane %v777_v17, %v1950_v63  ;;  %v780_v23 = vpop.xlane.xlu2 %779 }
 0x17d   : >> { %v1227_v24 = vperm.slane %v780_v23, %v1972_v21 }
 0x17e   : >> { %v1224_v28 = vsel %vm1052_vm7, %v1223_v18, %v1222_v15 }
 0x17f   : >> { %v1226_v30 = vsel %vm1056_vm8, %v1225_v40, %v1224_v28 }
 0x180   : >> { %v1228_v0 = vsel %vm1060_vm9, %v1227_v24, %v1226_v30 }
 0x183   : >> { %v783_v37 = vpop.xlane.xlu0 %782  ;;  %v786_v38 = vpop.xlane.xlu1 %785 }
 0x184   : >> { %v1229_v42 = vperm.slane %v783_v37, %v1969_v20  ;;  %v1231_v43 = vperm.slane %v786_v38, %v1975_v22  ;;  %v789_v44 = vpop.xlane.xlu2 %788 }
 0x185   : >> { %v1233_v45 = vperm.slane %v789_v44, %v1996_v49 }
 0x186   : >> { %v1230_v27 = vsel %vm1064_vm10, %v1229_v42, %v1228_v0 }
 0x187   : >> { %v1232_v33 = vsel %vm1068_vm11, %v1231_v43, %v1230_v27 }
 0x188   : >> { %v1234_v46 = vsel %vm2530_vm0, %v1233_v45, %v1232_v33 }
 0x18b   : >> { %v792_v47 = vpop.xlane.xlu0 %791  ;;  %v795_v51 = vpop.xlane.xlu1 %794 }
 0x18c   : >> { %v1235_v52 = vperm.slane %v792_v47, %v1993_v48  ;;  %v1237_v29 = vperm.slane %v795_v51, %v1999_v50  ;;  %v798_v53 = vpop.xlane.xlu2 %797 }
 0x18d   : >> { %v1239_v25 = vperm.slane %v798_v53, %v2017_v9 }
 0x18e   : >> { %v1236_v54 = vsel %vm2529_vm12, %v1235_v52, %v1234_v46 }
 0x18f   : >> { %v1238_v56 = vsel %vm1080_vm14, %v1237_v29, %v1236_v54 }
 0x190   : >> { %v1240_v57 = vsel %vm1084_vm15, %v1239_v25, %v1238_v56 }
 0x191   : >> { %v2404_v58 = vsel %vm1311_vm13, %v1240_v57, %v1310_v31 }
 0x193   : >> { %v801_v59 = vpop.xlane.xlu0 %800  ;;  %v804_v62 = vpop.xlane.xlu1 %803 }
 0x194   : >> { %v1241_v1 = vperm.slane %v801_v59, %v1899_v26  ;;  %v1242_v2 = vperm.slane %v804_v62, %v1913_v35  ;;  %v807_v32 = vpop.xlane.xlu2 %806 }
 0x195   : >> { %v1244_v17 = vperm.slane %v807_v32, %v1916_v36 }
 0x196   : >> { %v1243_v55 = vsel %vm1028_vm1, %v1242_v2, %v1241_v1 }
 0x197   : >> { %v1245_v28 = vsel %vm1032_vm2, %v1244_v17, %v1243_v55 }
 0x19b   : >> { %v810_v3 = vpop.xlane.xlu0 %809  ;;  %v813_v4 = vpop.xlane.xlu1 %812 }
 0x19c   : >> { %v816_v5 = vpop.xlane.xlu2 %815  ;;  %v1246_v18 = vperm.slane %v810_v3, %v1910_v34  ;;  %v1248_v30 = vperm.slane %v813_v4, %v1925_v41 }
 0x19d   : >> { %v1250_v43 = vperm.slane %v816_v5, %v1921_v39 }
 0x19e   : >> { %v1247_v0 = vsel %vm1036_vm3, %v1246_v18, %v1245_v28 }
 0x19f   : >> { %v1249_v44 = vsel %vm1040_vm4, %v1248_v30, %v1247_v0 }
 0x1a3   : >> { %v819_v19 = vpop.xlane.xlu0 %818  ;;  %v822_v6 = vpop.xlane.xlu1 %821 }
 0x1a4   : >> { %v825_v7 = vpop.xlane.xlu2 %824  ;;  %v1252_v45 = vperm.slane %v819_v19, %v1946_v61 }
 0x1a5   : >> { %v1256_v54 = vperm.slane %v825_v7, %v1950_v63 }
 0x1ab   : >> { %v828_v8 = vpop.xlane.xlu0 %827  ;;  %v831_v10 = vpop.xlane.xlu1 %830 }
 0x1ac   : >> { %v834_v11 = vpop.xlane.xlu2 %833  ;;  %v1258_v56 = vperm.slane %v828_v8, %v1972_v21  ;;  %v1260_v32 = vperm.slane %v831_v10, %v1969_v20 }
 0x1ad   : >> { %v1262_v19 = vperm.slane %v834_v11, %v1975_v22 }
 0x1b3   : >> { %v837_v31 = vpop.xlane.xlu0 %836  ;;  %v849_v12 = vpop.xlane.xlu1 %848 }
 0x1b4   : >> { %v852_v13 = vpop.xlane.xlu2 %851  ;;  %v1272_v37 = vperm.slane %v849_v12, %v1899_v26  ;;  %v1251_v26 = vsel %vm1044_vm5, %v1250_v43, %v1249_v44 }
 0x1b5   : >> { %v1273_v38 = vperm.slane %v852_v13, %v1913_v35  ;;  %v1254_v35 = vperm.slane %v822_v6, %v1943_v60  ;;  %v1264_v6 = vperm.slane %v837_v31, %v1996_v49 }
 0x1b7   : >> { %v1274_v27 = vsel %vm1028_vm1, %v1273_v38, %v1272_v37  ;;  %vm2531_vm1 = vmmov %vm2530_vm0 }
 0x1bb   : >> { %v855_v14 = vpop.xlane.xlu0 %854  ;;  %v858_v15 = vpop.xlane.xlu1 %857 }
 0x1bc   : >> { %v861_v16 = vpop.xlane.xlu2 %860  ;;  %v1275_v42 = vperm.slane %v855_v14, %v1916_v36  ;;  %v1277_v33 = vperm.slane %v858_v15, %v1910_v34  ;;  %v1253_v36 = vsel %vm1048_vm6, %v1252_v45, %v1251_v26 }
 0x1bd   : >> { %v1279_v29 = vperm.slane %v861_v16, %v1925_v41  ;;  %v1255_v34 = vsel %vm1052_vm7, %v1254_v35, %v1253_v36 }
 0x1be   : >> { %v1276_v51 = vsel %vm1032_vm2, %v1275_v42, %v1274_v27  ;;  %v1257_v41 = vsel %vm1056_vm8, %v1256_v54, %v1255_v34  ;;  %vm1313_vm2 = vcmask 1046534   ;;  %v1323_v27 = vld [vmem:[%s1726_s17 + $0x8] sm:$0xff] (%p221_p12) }
 0x1bf   : >> { %v1278_v53 = vsel %vm1036_vm3, %v1277_v33, %v1276_v51  ;;  %vm2532_vm3 = vmmov %vm2529_vm12 }
 0x1c0   : >> { %v1280_v57 = vsel %vm1040_vm4, %v1279_v29, %v1278_v53  ;;  %vm2533_vm4 = vmmov %vm2530_vm0 }
 0x1c3   : >> { %v864_v40 = vpop.xlane.xlu0 %863  ;;  %v867_v23 = vpop.xlane.xlu1 %866 }
 0x1c4   : >> { %v870_v24 = vpop.xlane.xlu2 %869  ;;  %v1281_v25 = vperm.slane %v864_v40, %v1921_v39  ;;  %v1283_v59 = vperm.slane %v867_v23, %v1946_v61  ;;  %v1259_v39 = vsel %vm1060_vm9, %v1258_v56, %v1257_v41 }
 0x1c5   : >> { %v1285_v3 = vperm.slane %v870_v24, %v1943_v60  ;;  %v1261_v61 = vsel %vm1064_vm10, %v1260_v32, %v1259_v39 }
 0x1c6   : >> { %v1282_v62 = vsel %vm1044_vm5, %v1281_v25, %v1280_v57  ;;  %v1263_v60 = vsel %vm1068_vm11, %v1262_v19, %v1261_v61  ;;  %vm2534_vm5 = vmmov %vm2532_vm3 }
 0x1c7   : >> { %v1284_v4 = vsel %vm1048_vm6, %v1283_v59, %v1282_v62  ;;  %vm1315_vm6 = vcmask 1047559  }
 0x1c8   : >> { %v1286_v7 = vsel %vm1052_vm7, %v1285_v3, %v1284_v4 }
 0x1cb   : >> { %v873_v46 = vpop.xlane.xlu0 %872  ;;  %v876_v47 = vpop.xlane.xlu1 %875 }
 0x1cc   : >> { %v879_v52 = vpop.xlane.xlu2 %878  ;;  %v1287_v5 = vperm.slane %v873_v46, %v1950_v63  ;;  %v1289_v8 = vperm.slane %v876_v47, %v1972_v21  ;;  %v1265_v63 = vsel %vm2531_vm1, %v1264_v6, %v1263_v60 }
 0x1cd   : >> { %v1291_v11 = vperm.slane %v879_v52, %v1969_v20 }
 0x1ce   : >> { %v1288_v12 = vsel %vm1056_vm8, %v1287_v5, %v1286_v7  ;;  %vm1325_vm8 = vcmp.ne.s32.totalorder (%p221_p12), %v1323_v27, 0 }
 0x1cf   : >> { %v1290_v16 = vsel %vm1060_vm9, %v1289_v8, %v1288_v12 }
 0x1d0   : >> { %v1292_v20 = vsel %vm1064_vm10, %v1291_v11, %v1290_v16 }
 0x1d3   : >> { %v882_v1 = vpop.xlane.xlu0 %881  ;;  %v840_v2 = vpop.xlane.xlu1 %839 }
 0x1d4   : >> { %v885_v55 = vpop.xlane.xlu2 %884  ;;  %v1266_v10 = vperm.slane %v840_v2, %v1993_v48  ;;  %v1293_v21 = vperm.slane %v882_v1, %v1975_v22 }
 0x1d5   : >> { %v1295_v24 = vperm.slane %v885_v55, %v1996_v49 }
 0x1d6   : >> { %v1267_v17 = vsel %vm2532_vm3, %v1266_v10, %v1265_v63  ;;  %v1294_v30 = vsel %vm1068_vm11, %v1293_v21, %v1292_v20 }
 0x1d7   : >> { %v1296_v38 = vsel %vm2533_vm4, %v1295_v24, %v1294_v30 }
 0x1db   : >> { %v843_v13 = vpop.xlane.xlu0 %842  ;;  %v888_v14 = vpop.xlane.xlu1 %887 }
 0x1dc   : >> { %v1268_v15 = vperm.slane %v843_v13, %v1999_v50  ;;  %v846_v31 = vpop.xlane.xlu2 %845  ;;  %v1297_v22 = vperm.slane %v888_v14, %v1993_v48 }
 0x1dd   : >> { %v1270_v18 = vperm.slane %v846_v31, %v2017_v9 }
 0x1de   : >> { %v1269_v40 = vsel %vm1080_vm14, %v1268_v15, %v1267_v17  ;;  %v1298_v44 = vsel %vm2534_vm5, %v1297_v22, %v1296_v38 }
 0x1df   : >> { %v1271_v23 = vsel %vm1084_vm15, %v1270_v18, %v1269_v40 }
 0x1e0   : >> { %v1314_v28 = vsel %vm1313_vm2, %v1271_v23, %v2404_v58 }
 0x1e3   : >> { %v891_v0 = vpop.xlane.xlu0 %890  ;;  %v894_v37 = vpop.xlane.xlu1 %893 }
 0x1e4   : >> { %v1299_v42 = vperm.slane %v891_v0, %v1999_v50  ;;  %v1301_v43 = vperm.slane %v894_v37, %v2017_v9  ;;  %v1322_v50 = vld [vmem:[%s1726_s17] sm:$0xff] (%p221_p12)  ;;  %s1587_s17 = scalar_lea.hbm (%p221_p12), %s2521_s3, 48 }
 0x1e5   : > { %223 = sbr.rel (!%p221_p12) target bundleno = 24 (0x18), region = 83  ;;  %vm1324_vm7 = vcmp.ne.s32.totalorder (%p221_p12), %v1322_v50, 0  ;;  %p1589_p3 = scmp.lt.s32.totalorder (%p221_p12), %s1587_s17, %s1583_s9 }
 0x1e6   : >> { %v1300_v45 = vsel %vm1080_vm14, %v1299_v42, %v1298_v44 }
 0x1e7   : >> { %v1302_v49 = vsel %vm1084_vm15, %v1301_v43, %v1300_v45  ;;  %p1590_p4 = por (%p221_p12), %p1589_p3, %p1588_p2 }
 0x1e8   : >> { %v1316_v58 = vsel %vm1315_vm6, %v1302_v49, %v1314_v28 }
 0x1e9   : >> { %1319 = vst [vmem:[%s1318_s29] sm:$0xff] %v1316_v58  ;;  %p1591_p7 = pnand (%p221_p12), %p1590_p4, %p1586_p1 }
 0x1f0   : > { %v1320_v48 = vld [vmem:[%s1728_s16] sm:$0xff]  ;;  %v1321_v33 = vld [vmem:[%s1728_s16 + $0x8] sm:$0xff] }
 0x1f1   : > { %v1326_v9 = vsel %vm1324_vm7, -1e+30, %v1320_v48  ;;  %v1327_v46 = vsel %vm1325_vm8, -1e+30, %v1321_v33 }
 0x1f2   : > { %1328 = vmax.xlane.f32.xlu0 %v1326_v9 }
 0x1fa   : > { %1330 = vmax.xlane.f32.xlu0 %v1327_v46 }
 0x265   : > { %v1329_v47 = vpop.xlane.xlu0 %1328 }
 0x266   : > { %v1332_v51 = vsub.f32 %v1326_v9, %v1329_v47 }
 0x268   : > { %v1334_v52 = vmul.f32 1.442695, %v1332_v51 }
 0x26a   : > { %1559 = vpow2.f32 %v1334_v52 }
 0x26d   : > { %v1331_v26 = vpop.xlane.xlu0 %1330 }
 0x26e   : > { %v1333_v35 = vsub.f32 %v1327_v46, %v1331_v26 }
 0x270   : > { %v1560_v36 = vpop.eup %1559  ;;  %v1336_v29 = vmul.f32 1.442695, %v1333_v35 }
 0x271   : > { %1338 = vadd.xlane.f32.xlu1 %v1560_v36 }
 0x272   : > { %1561 = vpow2.f32 %v1336_v29 }
 0x278   : > { %v1562_v53 = vpop.eup %1561 }
 0x279   : > { %1340 = vadd.xlane.f32.xlu1 %v1562_v53 }
 0x2e4   : > { %v1339_v25 = vpop.xlane.xlu1 %1338 }
 0x2e5   : > { %1563 = vrcp.f32 %v1339_v25  ;;  %v1353_v59 = vand.u32 2147483648, %v1339_v25  ;;  %v1351_v1 = vand.u32 2147483647, %v1339_v25  ;;  %vm1347_vm10 = vweird.f32 %v1339_v25 }
 0x2e7   : > { %v1354_v32 = vor.u32 1.1754944e-38, %v1353_v59  ;;  %vm1352_vm14 = vcmp.eq.f32.partialorder %v1351_v1, 8.507059e+37 }
 0x2eb   : > { %v1564_v54 = vpop.eup %1563 }
 0x2ec   : > { %v1343_v34 = vmul.f32 %v1564_v54, %v1339_v25  ;;  %v1341_v56 = vpop.xlane.xlu1 %1340  ;;  %vm1348_vm9 = vweird.f32 %v1564_v54 }
 0x2ed   : > { %1565 = vrcp.f32 %v1341_v56  ;;  %vm1349_vm11 = vmor %vm1347_vm10, %vm1348_vm9  ;;  %v1368_v19 = vand.u32 2147483648, %v1341_v56  ;;  %v1366_v6 = vand.u32 2147483647, %v1341_v56  ;;  %vm1362_vm0 = vweird.f32 %v1341_v56 }
 0x2ee   : > { %v1344_v57 = vsub.f32 1.0, %v1343_v34 }
 0x2ef   : > { %v1369_v8 = vor.u32 1.1754944e-38, %v1368_v19  ;;  %vm1367_vm13 = vcmp.eq.f32.partialorder %v1366_v6, 8.507059e+37 }
 0x2f0   : > { %v1345_v62 = vmul.f32 %v1564_v54, %v1344_v57 }
 0x2f2   : > { %v1346_v2 = vadd.f32 %v1564_v54, %v1345_v62 }
 0x2f3   : > { %v1566_v41 = vpop.eup %1565 }
 0x2f4   : > { %v1350_v55 = vsel %vm1349_vm11, %v1564_v54, %v1346_v2  ;;  %v1358_v39 = vmul.f32 %v1566_v41, %v1341_v56  ;;  %vm1363_vm15 = vweird.f32 %v1566_v41 }
 0x2f5   : > { %v1355_v3 = vsel %vm1352_vm14, %v1354_v32, %v1350_v55  ;;  %vm1364_vm12 = vmor %vm1362_vm0, %vm1363_vm15 }
 0x2f6   : > { %v1356_v4 = vmul.f32 %v1560_v36, %v1355_v3  ;;  %v1359_v5 = vsub.f32 1.0, %v1358_v39 }
 0x2f8   : > { %1372 = vst [vmem:[%s1728_s16] sm:$0xff] %v1356_v4  ;;  %v1360_v61 = vmul.f32 %v1566_v41, %v1359_v5 }
 0x2fa   : > { %v1361_v7 = vadd.f32 %v1566_v41, %v1360_v61 }
 0x2fc   : > { %v1365_v10 = vsel %vm1364_vm12, %v1566_v41, %v1361_v7 }
 0x2fd   : > { %v1370_v12 = vsel %vm1367_vm13, %v1369_v8, %v1365_v10 }
 0x2fe   : > { %v1371_v60 = vmul.f32 %v1562_v53, %v1370_v12 }
 0x300   : > { %1373 = vst [vmem:[%s1728_s16 + $0x8] sm:$0xff] %v1371_v60 }
 0x301   : > { %1594 = shalt.err (!%p1591_p7)
}
 0x302   : > { %s1639_s24 = smov 128   ;;  %s1640_s16 = smov 8  }
 0x303   : > { %1509 = dma.vmem_to_hbm [thread:$0]  (%p1696_p5), %s1388_s6, 256, %s1390_s7, %s1375_s25, %s1639_s24, %s1639_s24, %s1640_s16  }
 0x304 PF: > { %p1515_p8 = scmp.ge.s32.totalorder %s1633_s15, 2  ;;  %s1404_s27 = sand.u32 1, %s1621_s12  }
 0x305   : > { %s1405_s28 = scalar_lea.sflag [#allocation3], %s1404_s27 }
 0x306   : > { %p1512_p9 = pnand %p1515_p8, %p1700_p6 }
 0x308   : > { %p1513_p10 = pneg %p1512_p9 }
 0x30a   : > { %1616 = dma.done.wait (%p1513_p10), %s1405_s28, 256  }
 0x30b   : > { %1618 = vsyncadd (%p1513_p10), %s1405_s28, 4294967040  ;;  %p13_p11 = scmp.ge.s32.totalorder %s1684_s18, 5   ;;  %s2535_s12 = smov %s1625_s13 }
 0x30c   : > { %s2536_s13 = smov %s1629_s14  ;;  %s2537_s14 = smov %s1694_s21 }
 0x30d   : > { %s2538_s15 = smov %s1684_s18  ;;  %15 = sbr.rel (!%p13_p11) target bundleno = 3 (0x3), region = 94 }
 0x312   :  { %1411 = vsyncpa [#allocation3], 1 }
 0x313   :  { %1413 = vsyncpa [#allocation3 + $0x1], 1 }

</bundles_post_ra>
